<compile_context>
chip_gen: v6e
topology: v6e:2x2x1
jax: 0.10.0
libtpu: 0.0.40
codegen_flags: <defaults>
</compile_context>

<pallas_src>
import functools

import jax
import jax.numpy as jnp
from jax.experimental import pallas as pl
from jax.experimental.pallas import tpu as pltpu


# ---------------------------------------------------------------------------
# Helpers
# ---------------------------------------------------------------------------
def _round_up(n: int, m: int) -> int:
    return ((n + m - 1) // m) * m


def _pick_tile(n: int, candidates) -> int:
    for c in candidates:
        if n % c == 0:
            return c
    return n


def _vmem_cap() -> int:
    """Physical VMEM capacity of the current TPU generation (fallback 128 MiB)."""
    try:
        cap = int(pltpu.get_tpu_info().vmem_capacity_bytes)
        if cap > 0:
            return cap
    except Exception:
        pass
    return 128 << 20


def _vmem_limit(bytes_needed: int, margin: int = 6 << 20) -> int:
    """Scoped-VMEM request: what we actually need + headroom, capped at HW."""
    cap = _vmem_cap()
    return int(max(32 << 20, min(cap - (2 << 20), int(bytes_needed) + margin)))


# ---------------------------------------------------------------------------
# Kernel 1: liquid weight modulation (hoisted out of the per-token hot path).
#     out = w + dws * sin(step * tf + tp)
# ---------------------------------------------------------------------------
def _modulate_kernel(step_ref, w_ref, dws_ref, tf_ref, tp_ref, out_ref):
    # step loses integer precision past 2^24 when cast to f32 (cosmetic).
    step = step_ref[0].astype(jnp.float32)
    w = w_ref[...].astype(jnp.float32)
    dws = dws_ref[...].astype(jnp.float32)
    tf = tf_ref[...].astype(jnp.float32)
    tp = tp_ref[...].astype(jnp.float32)
    out_ref[...] = (w + dws * jnp.sin(step * tf + tp)).astype(out_ref.dtype)


def _modulate_weight(w, dws, tf, tp, step_i32, out_dtype):
    """Inputs are pre-padded (R, C) with R, C multiples of 128."""
    R, C = w.shape
    rt = _pick_tile(R, (512, 256, 128))
    ct = _pick_tile(C, (2048, 1024, 512, 256, 128))
    in_sz = jnp.dtype(w.dtype).itemsize
    block_bytes = rt * ct * (4 * in_sz + jnp.dtype(out_dtype).itemsize)
    spec = pl.BlockSpec((rt, ct), lambda i, j, step: (i, j))
    return pl.pallas_call(
        _modulate_kernel,
        out_shape=jax.ShapeDtypeStruct((R, C), out_dtype),
        grid_spec=pltpu.PrefetchScalarGridSpec(
            num_scalar_prefetch=1,
            grid=(R // rt, C // ct),
            in_specs=[spec, spec, spec, spec],
            out_specs=spec,
        ),
        compiler_params=pltpu.CompilerParams(
            dimension_semantics=("parallel", "parallel"),
            vmem_limit_bytes=_vmem_limit(2 * block_bytes),  # 2x: double buffering
        ),
    )(step_i32, w, dws, tf, tp)


# ---------------------------------------------------------------------------
# Kernel 2: main hot path — LayerNorm, two matmuls, GELU, bias, residual.
# ---------------------------------------------------------------------------
def _layer_norm(x, gamma, beta, *, eps, n_features, padded):
    """Two-pass LayerNorm in f32.  Padded lanes of x are zero; padded
    gamma/beta are zero so padded output lanes stay zero."""
    inv_h = 1.0 / n_features
    mean = jnp.sum(x, axis=-1, keepdims=True) * inv_h
    centered = x - mean
    if padded:
        lane = jax.lax.broadcasted_iota(jnp.int32, x.shape, dimension=x.ndim - 1)
        sq_src = jnp.where(lane < n_features, centered, 0.0)
    else:
        sq_src = centered
    var = jnp.sum(sq_src * sq_src, axis=-1, keepdims=True) * inv_h
    return centered * jax.lax.rsqrt(var + eps) * gamma + beta


def _liquid_mlp_kernel(x_ref, gamma_ref, beta_ref, w1_ref, b1_ref,
                       w2_ref, b2_ref, out_ref, *,
                       eps, n_features, padded, approx_gelu):
    """Fully-resident-weights path."""
    x = x_ref[...].astype(jnp.float32)                                  # (tm, Hp)
    h = _layer_norm(x, gamma_ref[...], beta_ref[...],
                    eps=eps, n_features=n_features, padded=padded)

    y = jnp.dot(h.astype(w1_ref.dtype), w1_ref[...],
                preferred_element_type=jnp.float32) + b1_ref[...]       # (tm, Ip)
    # Cast immediately so the only live (tm, Ip) value is matmul dtype.
    y = jax.nn.gelu(y, approximate=approx_gelu).astype(w2_ref.dtype)

    o = jnp.dot(y, w2_ref[...], preferred_element_type=jnp.float32) + b2_ref[...]

    # TODO(synk): nn.Dropout is identity in eval mode; training-mode dropout not implemented.
    out_ref[...] = (o + x).astype(out_ref.dtype)


def _liquid_mlp_blocked_kernel(x_ref, gamma_ref, beta_ref, w1_ref, b1_ref,
                               w2_ref, b2_ref, out_ref, h_scr, acc_scr, *,
                               eps, n_features, padded, approx_gelu):
    """Ip-blocked streaming path: grid (token_tiles, Ip // ti)."""
    j = pl.program_id(1)

    @pl.when(j == 0)
    def _():
        x = x_ref[...].astype(jnp.float32)
        h = _layer_norm(x, gamma_ref[...], beta_ref[...],
                        eps=eps, n_features=n_features, padded=padded)
        h_scr[...] = h.astype(h_scr.dtype)
        acc_scr[...] = jnp.zeros_like(acc_scr)

    y = jnp.dot(h_scr[...], w1_ref[...],
                preferred_element_type=jnp.float32) + b1_ref[...]       # (tm, ti)
    y = jax.nn.gelu(y, approximate=approx_gelu).astype(w2_ref.dtype)
    acc_scr[...] += jnp.dot(y, w2_ref[...], preferred_element_type=jnp.float32)

    @pl.when(j == pl.num_programs(1) - 1)
    def _():
        # TODO(synk): nn.Dropout is identity in eval mode; training-mode dropout not implemented.
        out_ref[...] = (acc_scr[...] + b2_ref[...]
                        + x_ref[...].astype(jnp.float32)).astype(out_ref.dtype)


# ---------------------------------------------------------------------------
# Parameter preparation (once per model, NOT per forward call).
# ---------------------------------------------------------------------------
def prepare_params(params, *, matmul_dtype=jnp.bfloat16, mod_dtype=jnp.float32):
    """Pre-transpose (PyTorch (out,in) -> canonical (in,out)) and zero-pad all
    liquid parameters to lane-aligned shapes.  mod_dtype=bf16 halves the HBM
    read bytes of the modulation kernel (useful on v5e/v6e)."""
    H = params["ln_gamma"].shape[0]
    I = params["w1"].shape[0]
    Hp = _round_up(H, 128)
    Ip = _round_up(I, 128)
    f32 = jnp.float32

    def pad_t(a, r, c, dt):
        a = jnp.asarray(a, f32).T
        return jnp.pad(a, ((0, r - a.shape[0]), (0, c - a.shape[1]))).astype(dt)

    def pad1(a, n):
        return jnp.pad(jnp.asarray(a, f32), (0, n - a.shape[0]))

    return dict(
        H=H, I=I, Hp=Hp, Ip=Ip, matmul_dtype=matmul_dtype,
        gamma=pad1(params["ln_gamma"], Hp)[None, :],
        beta=pad1(params["ln_beta"], Hp)[None, :],
        # intermediate LiquidFunction: canonical (Hp, Ip)
        w1=pad_t(params["w1"], Hp, Ip, mod_dtype),
        dws1=pad_t(params["dws1"], Hp, Ip, mod_dtype),
        tf1=pad_t(params["tf1"], Hp, Ip, mod_dtype),
        tp1=pad_t(params["tp1"], Hp, Ip, mod_dtype),
        b1=pad1(params["b1"], Ip),
        dbs1=pad1(params["dbs1"], Ip),
        # output LiquidFunction: canonical (Ip, Hp)
        w2=pad_t(params["w2"], Ip, Hp, mod_dtype),
        dws2=pad_t(params["dws2"], Ip, Hp, mod_dtype),
        tf2=pad_t(params["tf2"], Ip, Hp, mod_dtype),
        tp2=pad_t(params["tp2"], Ip, Hp, mod_dtype),
        b2=pad1(params["b2"], Hp),
        dbs2=pad1(params["dbs2"], Hp),
    )


# ---------------------------------------------------------------------------
# Public forward
# ---------------------------------------------------------------------------
def liquid_mlp(x, prep, step, *, eps=1e-12, approx_gelu=False, token_tile=256,
               force_blocked=False, intermediate_tile=None):
    """Eval-mode forward of LiquidMLP.  x: (B, S, H) float32 -> (B, S, H)."""
    B, S, H = x.shape
    assert H == prep["H"], "prepared params do not match input hidden size"
    Hp, Ip = prep["Hp"], prep["Ip"]
    matmul_dtype = prep["matmul_dtype"]
    wsz = jnp.dtype(matmul_dtype).itemsize
    T = B * S

    tm = min(token_tile, _round_up(T, 8))
    Tp = _round_up(T, tm)
    padded_h = Hp != H

    x2 = x.reshape(T, H)
    if padded_h or Tp != T:
        x2 = jnp.pad(x2, ((0, Tp - T), (0, Hp - H)))

    # --- per-step weight / bias modulation (hoisted out of the hot path) ---
    step_i32 = jnp.asarray([step], jnp.int32)
    w1_dyn = _modulate_weight(prep["w1"], prep["dws1"], prep["tf1"], prep["tp1"],
                              step_i32, matmul_dtype)                   # (Hp, Ip)
    w2_dyn = _modulate_weight(prep["w2"], prep["dws2"], prep["tf2"], prep["tp2"],
                              step_i32, matmul_dtype)                   # (Ip, Hp)
    sin_step = jnp.sin(jnp.float32(step) * 0.01)
    b1_dyn = (prep["b1"] + prep["dbs1"] * sin_step)[None, :]            # (1, Ip)
    b2_dyn = (prep["b2"] + prep["dbs2"] * sin_step)[None, :]            # (1, Hp)

    # --- path selection: fully-resident weights vs Ip-blocked streaming ---
    cap = _vmem_cap()
    resident_w_bytes = 2 * Hp * Ip * wsz
    use_blocked = force_blocked or (resident_w_bytes > cap // 3)

    kern_kwargs = dict(eps=eps, n_features=H, padded=padded_h,
                       approx_gelu=approx_gelu)
    out_shape = jax.ShapeDtypeStruct((Tp, Hp), x.dtype)
    args = (x2, prep["gamma"], prep["beta"], w1_dyn, b1_dyn, w2_dyn, b2_dyn)

    def run_resident(single_buffer):
        def res(shape):
            if single_buffer:
                return pl.BlockSpec(shape, lambda i: (0, 0),
                                    pipeline_mode=pl.Buffered(1))
            return pl.BlockSpec(shape, lambda i: (0, 0))
        nbuf = 1 if single_buffer else 2
        vlim = _vmem_limit(
            2 * (2 * tm * Hp * 4)                                 # x / out (2-deep)
            + nbuf * (2 * Hp * Ip * wsz + (3 * Hp + Ip) * 4)      # resident operands
            + tm * Ip * 4)                                        # intermediate headroom
        return pl.pallas_call(
            functools.partial(_liquid_mlp_kernel, **kern_kwargs),
            out_shape=out_shape,
            grid=(Tp // tm,),
            in_specs=[
                pl.BlockSpec((tm, Hp), lambda i: (i, 0)),   # x: streamed
                res((1, Hp)),                               # gamma   (resident)
                res((1, Hp)),                               # beta    (resident)
                res((Hp, Ip)),                              # w1_dyn  (resident)
                res((1, Ip)),                               # b1_dyn  (resident)
                res((Ip, Hp)),                              # w2_dyn  (resident)
                res((1, Hp)),                               # b2_dyn  (resident)
            ],
            out_specs=pl.BlockSpec((tm, Hp), lambda i: (i, 0)),
            compiler_params=pltpu.CompilerParams(
                dimension_semantics=("parallel",),
                vmem_limit_bytes=vlim,
            ),
        )(*args)

    def run_blocked(single_buffer):
        ti = intermediate_tile or _pick_tile(Ip, (1024, 512, 256, 128))
        assert Ip % ti == 0
        def res(shape):
            if single_buffer:
                return pl.BlockSpec(shape, lambda i, j: (0, 0),
                                    pipeline_mode=pl.Buffered(1))
            return pl.BlockSpec(shape, lambda i, j: (0, 0))
        nbuf = 1 if single_buffer else 2
        vlim = _vmem_limit(
            2 * (2 * tm * Hp * 4)                                 # x / out (2-deep)
            + 2 * (2 * Hp * ti * wsz + ti * 4)                    # streamed w1/w2/b1 blocks
            + nbuf * (3 * Hp) * 4                                 # gamma/beta/b2
            + tm * Hp * (wsz + 4)                                 # h / acc scratch
            + tm * ti * 4)                                        # intermediate headroom
        return pl.pallas_call(
            functools.partial(_liquid_mlp_blocked_kernel, **kern_kwargs),
            out_shape=out_shape,
            grid=(Tp // tm, Ip // ti),
            in_specs=[
                pl.BlockSpec((tm, Hp), lambda i, j: (i, 0)),   # x
                res((1, Hp)),                                  # gamma
                res((1, Hp)),                                  # beta
                pl.BlockSpec((Hp, ti), lambda i, j: (0, j)),   # w1 slab
                pl.BlockSpec((1, ti), lambda i, j: (0, j)),    # b1 slab
                pl.BlockSpec((ti, Hp), lambda i, j: (j, 0)),   # w2 slab
                res((1, Hp)),                                  # b2
            ],
            out_specs=pl.BlockSpec((tm, Hp), lambda i, j: (i, 0)),
            scratch_shapes=[pltpu.VMEM((tm, Hp), matmul_dtype),   # normalized h
                            pltpu.VMEM((tm, Hp), jnp.float32)],   # f32 accumulator
            compiler_params=pltpu.CompilerParams(
                dimension_semantics=("parallel", "arbitrary"),
                vmem_limit_bytes=vlim,
            ),
        )(*args)

    runner = run_blocked if use_blocked else run_resident
    try:
        out = runner(True)        # single-buffer resident operands (Buffered(1))
    except Exception:
        out = runner(False)       # fallback: default 2-deep buffering

    if padded_h or Tp != T:
        out = out[:T, :H]
    return out.reshape(B, S, H)


# ---------------------------------------------------------------------------
# Parameter init (mirrors LiquidFunction/LiquidMLP.__init__) and reference.
# ---------------------------------------------------------------------------
def init_params(key, hidden_size, intermediate_size):
    ks = jax.random.split(key, 8)
    f32 = jnp.float32
    return {
        "ln_gamma": jnp.ones((hidden_size,), f32),
        "ln_beta": jnp.zeros((hidden_size,), f32),
        # intermediate LiquidFunction (hidden -> intermediate), PyTorch (out, in)
        "w1": jax.random.normal(ks[0], (intermediate_size, hidden_size), f32) * 0.02,
        "b1": jnp.zeros((intermediate_size,), f32),
        "dws1": jnp.ones((intermediate_size, hidden_size), f32) * 0.01,
        "dbs1": jnp.ones((intermediate_size,), f32) * 0.01,
        "tf1": jax.random.normal(ks[1], (intermediate_size, hidden_size), f32) * 0.01,
        "tp1": jax.random.normal(ks[2], (intermediate_size, hidden_size), f32) * 0.01,
        # output LiquidFunction (intermediate -> hidden)
        "w2": jax.random.normal(ks[3], (hidden_size, intermediate_size), f32) * 0.02,
        "b2": jnp.zeros((hidden_size,), f32),
        "dws2": jnp.ones((hidden_size, intermediate_size), f32) * 0.01,
        "dbs2": jnp.ones((hidden_size,), f32) * 0.01,
        "tf2": jax.random.normal(ks[4], (hidden_size, intermediate_size), f32) * 0.01,
        "tp2": jax.random.normal(ks[5], (hidden_size, intermediate_size), f32) * 0.01,
    }


def liquid_mlp_ref(x, p, step, *, eps=1e-12, approx_gelu=False):
    """Pure-JAX reference mirroring the PyTorch forward (eval-mode dropout)."""
    step = jnp.float32(step)
    mean = jnp.mean(x, axis=-1, keepdims=True)
    var = jnp.mean((x - mean) ** 2, axis=-1, keepdims=True)
    h = (x - mean) / jnp.sqrt(var + eps) * p["ln_gamma"] + p["ln_beta"]

    w1 = p["w1"] + p["dws1"] * jnp.sin(step * p["tf1"] + p["tp1"])
    b1 = p["b1"] + p["dbs1"] * jnp.sin(step * 0.01)
    y = jax.nn.gelu(h @ w1.T + b1, approximate=approx_gelu)

    w2 = p["w2"] + p["dws2"] * jnp.sin(step * p["tf2"] + p["tp2"])
    b2 = p["b2"] + p["dbs2"] * jnp.sin(step * 0.01)
    return (y @ w2.T + b2) + x


if __name__ == "__main__":
    key = jax.random.PRNGKey(0)
    k_x, k_p, k_p2 = jax.random.split(key, 3)

    batch, seq, hidden, intermediate = 2, 8, 32, 64
    step = 3

    x = jax.random.normal(k_x, (batch, seq, hidden), jnp.float32)
    params = init_params(k_p, hidden, intermediate)

    # 1) Production config: bf16 MXU operands + tanh (EUP) GELU, loose tolerance.
    prep_bf16 = prepare_params(params, matmul_dtype=jnp.bfloat16)
    out = jax.block_until_ready(liquid_mlp(x, prep_bf16, step, approx_gelu=True))
    ref_tanh = liquid_mlp_ref(x, params, step, approx_gelu=True)
    assert out.shape == (batch, seq, hidden)
    assert jnp.allclose(out, ref_tanh, atol=2e-2, rtol=2e-2), "bf16 kernel mismatch"

    # 2) f32 MXU operands + exact erf GELU: tight tolerance vs reference.
    prep_f32 = prepare_params(params, matmul_dtype=jnp.float32)
    ref = liquid_mlp_ref(x, params, step)
    out_f32 = jax.block_until_ready(liquid_mlp(x, prep_f32, step))
    assert jnp.allclose(out_f32, ref, atol=1e-4, rtol=1e-4), "f32 kernel mismatch"

    # 3) Ip-blocked streaming path (auto-selected for large models / v7x);
    #    forced here at a small shape that still exercises the accumulator.
    params_blk = init_params(k_p2, hidden, 256)
    prep_blk = prepare_params(params_blk, matmul_dtype=jnp.float32)
    ref_blk = liquid_mlp_ref(x, params_blk, step)
    out_blk = jax.block_until_ready(
        liquid_mlp(x, prep_blk, step, force_blocked=True, intermediate_tile=128))
    assert jnp.allclose(out_blk, ref_blk, atol=1e-4, rtol=1e-4), "blocked path mismatch"

    print("KERNEL_OK")
</pallas_src>

<mosaic_0001>
module attributes {stable_mosaic.version = 11 : i64} {
  func.func @_modulate_kernel(%arg0: i32, %arg1: i32, %arg2: memref<1xi32, #tpu.memory_space<smem>>, %arg3: memref<128x128xf32, #tpu.memory_space<vmem>>, %arg4: memref<128x128xf32, #tpu.memory_space<vmem>>, %arg5: memref<128x128xf32, #tpu.memory_space<vmem>>, %arg6: memref<128x128xf32, #tpu.memory_space<vmem>>, %arg7: memref<128x128xbf16, #tpu.memory_space<vmem>>) attributes {dimension_semantics = [#tpu.dimension_semantics<parallel>, #tpu.dimension_semantics<parallel>], iteration_bounds = array<i64: 1, 1>, scalar_prefetch = 1 : i64, scratch_operands = 0 : i64, tpu.core_type = #tpu.core_type<tc>, window_params = [{transform_indices = @transform_0, window_bounds = array<i64: 128, 128>}, {transform_indices = @transform_1, window_bounds = array<i64: 128, 128>}, {transform_indices = @transform_2, window_bounds = array<i64: 128, 128>}, {transform_indices = @transform_3, window_bounds = array<i64: 128, 128>}, {transform_indices = @transform_4, window_bounds = array<i64: 128, 128>}]} {
    %c0 = arith.constant 0 : index
    %0 = memref.load %arg2[%c0] : memref<1xi32, #tpu.memory_space<smem>>
    %1 = arith.sitofp %0 : i32 to f32
    %c0_0 = arith.constant 0 : index
    %c0_1 = arith.constant 0 : index
    %2 = vector.load %arg3[%c0_0, %c0_1] : memref<128x128xf32, #tpu.memory_space<vmem>>, vector<128x128xf32>
    %c0_2 = arith.constant 0 : index
    %c0_3 = arith.constant 0 : index
    %3 = vector.load %arg4[%c0_2, %c0_3] : memref<128x128xf32, #tpu.memory_space<vmem>>, vector<128x128xf32>
    %c0_4 = arith.constant 0 : index
    %c0_5 = arith.constant 0 : index
    %4 = vector.load %arg5[%c0_4, %c0_5] : memref<128x128xf32, #tpu.memory_space<vmem>>, vector<128x128xf32>
    %c0_6 = arith.constant 0 : index
    %c0_7 = arith.constant 0 : index
    %5 = vector.load %arg6[%c0_6, %c0_7] : memref<128x128xf32, #tpu.memory_space<vmem>>, vector<128x128xf32>
    %6 = vector.broadcast %1 : f32 to vector<128x128xf32>
    %7 = arith.mulf %6, %4 : vector<128x128xf32>
    %8 = arith.addf %7, %5 : vector<128x128xf32>
    %9 = math.sin %8 : vector<128x128xf32>
    %10 = arith.mulf %3, %9 : vector<128x128xf32>
    %11 = arith.addf %2, %10 : vector<128x128xf32>
    %12 = arith.truncf %11 : vector<128x128xf32> to vector<128x128xbf16>
    %c0_8 = arith.constant 0 : index
    %c0_9 = arith.constant 0 : index
    %13 = vector.load %arg7[%c0_8, %c0_9] : memref<128x128xbf16, #tpu.memory_space<vmem>>, vector<128x128xbf16>
    tpu.vector_store %arg7[%c0_8, %c0_9], %12 {strides = array<i32>} : memref<128x128xbf16, #tpu.memory_space<vmem>>, vector<128x128xbf16>,
    return
  }
  func.func @transform_0(%arg0: i32, %arg1: i32, %arg2: memref<1xi32, #tpu.memory_space<smem>>) -> (i32, i32) {
    %c0_i32 = arith.constant 0 : i32
    return %arg0, %arg1 : i32, i32
  }
  func.func @transform_1(%arg0: i32, %arg1: i32, %arg2: memref<1xi32, #tpu.memory_space<smem>>) -> (i32, i32) {
    %c0_i32 = arith.constant 0 : i32
    return %arg0, %arg1 : i32, i32
  }
  func.func @transform_2(%arg0: i32, %arg1: i32, %arg2: memref<1xi32, #tpu.memory_space<smem>>) -> (i32, i32) {
    %c0_i32 = arith.constant 0 : i32
    return %arg0, %arg1 : i32, i32
  }
  func.func @transform_3(%arg0: i32, %arg1: i32, %arg2: memref<1xi32, #tpu.memory_space<smem>>) -> (i32, i32) {
    %c0_i32 = arith.constant 0 : i32
    return %arg0, %arg1 : i32, i32
  }
  func.func @transform_4(%arg0: i32, %arg1: i32, %arg2: memref<1xi32, #tpu.memory_space<smem>>) -> (i32, i32) {
    %c0_i32 = arith.constant 0 : i32
    return %arg0, %arg1 : i32, i32
  }
}

</mosaic_0001>

<bundles_post_ra>
// kernel: tpu_custom_call.1
= control target key start
LH: loop header
LB: loop body
LE: loop exit
PB: predicated region body
PF: predicated region fallthrough
CT: control target
= control target key end

     0   :  { %11 = vsyncpa [#allocation5], 0  ;;  %s3981_s0 = inlined_call_operand.<no memory space> [shape: s32[1], index: 0, kind: input, shape index: {}]   ;;  %s3982_s1 = inlined_call_operand.hbm [shape: f32[128,128], index: 1, kind: input, shape index: {}]   ;;  %s3983_s2 = inlined_call_operand.hbm [shape: f32[128,128], index: 2, kind: input, shape index: {}]   ;;  %s3984_s3 = inlined_call_operand.hbm [shape: f32[128,128], index: 3, kind: input, shape index: {}]   ;;  %s3985_s4 = inlined_call_operand.hbm [shape: f32[128,128], index: 4, kind: input, shape index: {}]   ;;  %s3986_s5 = inlined_call_operand.hbm [shape: bf16[128,128], index: 5, kind: output, shape index: {}]  }
   0x1   :  { %12 = vsyncpa [#allocation8], 0 }
   0x2   :  { %13 = vsyncpa [#allocation11], 0 }
   0x3   :  { %14 = vsyncpa [#allocation6], 0  ;;  %s2363_s18 = smov [#allocation7]   ;;  %s2364_s20 = smov [#allocation4]  }
   0x4   :  { %s32_s19 = sshll.u32 %s2363_s18, 4  ;;  %s20_s21 = sshll.u32 %s2364_s20, 4  ;;  %s33_s19 = int_to_ptr.vmem [resolvable:$true] %s32_s19  ;;  %s21_s21 = int_to_ptr.vmem [resolvable:$true] %s20_s21 }
   0x5   :  { %s2263_s22 = scalar_lea.vmem %s33_s19, 2048  ;;  %p2268_p1 = scmp.lt.s32.totalorder %s33_s19, %s33_s19 }
   0x6   :  { %p2264_p0 = scmp.ne.s32.totalorder %s33_s19, %s2263_s22  ;;  %p2269_p2 = scmp.lt.s32.totalorder %s2263_s22, %s2263_s22 }
   0x8   :  { %p2270_p3 = por %p2269_p2, %p2268_p1 }
   0xa   :  { %p2271_p4 = pnand %p2270_p3, %p2264_p0 }
   0xc   :  { %2274 = shalt.err (!%p2271_p4)
}
   0xd   :  { %s2365_s23 = smov 128   ;;  %s2366_s24 = smov 8  }
   0xe   :  { %38 = dma.hbm_to_vmem [thread:$0]  %s3983_s2, 2048, %s33_s19, [#allocation8], %s2365_s23, %s2365_s23, %s2366_s24  }
   0xf   :  { %s2283_s27 = scalar_lea.vmem %s21_s21, 2048  ;;  %p2288_p6 = scmp.lt.s32.totalorder %s21_s21, %s21_s21 }
  0x10   :  { %p2284_p5 = scmp.ne.s32.totalorder %s21_s21, %s2283_s27  ;;  %p2289_p7 = scmp.lt.s32.totalorder %s2283_s27, %s2283_s27 }
  0x12   :  { %p2290_p8 = por %p2289_p7, %p2288_p6 }
  0x14   :  { %p2291_p9 = pnand %p2290_p8, %p2284_p5 }
  0x16   :  { %2294 = shalt.err (!%p2291_p9)
}
  0x17   :  { %26 = dma.hbm_to_vmem [thread:$0]  %s3982_s1, 2048, %s21_s21, [#allocation5], %s2365_s23, %s2365_s23, %s2366_s24  }
  0x18   :  { %s2367_s30 = smov [#allocation9]   ;;  %s2368_s7 = smov [#allocation10]  }
  0x19   :  { %s44_s6 = sshll.u32 %s2367_s30, 4  ;;  %s56_s8 = sshll.u32 %s2368_s7, 4  ;;  %s45_s6 = int_to_ptr.vmem [resolvable:$true] %s44_s6  ;;  %s57_s8 = int_to_ptr.vmem [resolvable:$true] %s56_s8 }
  0x1a   :  { %s2303_s2 = scalar_lea.vmem %s45_s6, 2048  ;;  %p2308_p11 = scmp.lt.s32.totalorder %s45_s6, %s45_s6 }
  0x1b   :  { %p2304_p10 = scmp.ne.s32.totalorder %s45_s6, %s2303_s2  ;;  %p2309_p12 = scmp.lt.s32.totalorder %s2303_s2, %s2303_s2 }
  0x1d   :  { %p2310_p13 = por %p2309_p12, %p2308_p11 }
  0x1f   :  { %p2311_p0 = pnand %p2310_p13, %p2304_p10 }
  0x21   :  { %2314 = shalt.err (!%p2311_p0)
}
  0x22   :  { %50 = dma.hbm_to_vmem [thread:$0]  %s3984_s3, 2048, %s45_s6, [#allocation8], %s2365_s23, %s2365_s23, %s2366_s24  }
  0x23   :  { %s2323_s1 = scalar_lea.vmem %s57_s8, 2048  ;;  %p2328_p2 = scmp.lt.s32.totalorder %s57_s8, %s57_s8 }
  0x24   :  { %p2324_p1 = scmp.ne.s32.totalorder %s57_s8, %s2323_s1  ;;  %p2329_p3 = scmp.lt.s32.totalorder %s2323_s1, %s2323_s1 }
  0x26   :  { %p2330_p4 = por %p2329_p3, %p2328_p2 }
  0x28   :  { %p2331_p5 = pnand %p2330_p4, %p2324_p1 }
  0x2a   :  { %2334 = shalt.err (!%p2331_p5)
}
  0x2b   :  { %62 = dma.hbm_to_vmem [thread:$0]  %s3985_s4, 2048, %s57_s8, [#allocation11], %s2365_s23, %s2365_s23, %s2366_s24  }
  0x2c   :  { %2355 = dma.done.wait [#allocation5], 2048  }
  0x2d   :  { %2356 = vsyncadd [#allocation5], 4294965248 }
  0x2e   :  { %2357 = dma.done.wait [#allocation8], 4096  }
  0x2f   :  { %2358 = vsyncadd [#allocation8], 4294963200 }
  0x30   :  { %2359 = dma.done.wait [#allocation11], 2048  }
  0x31   :  { %2360 = vsyncadd [#allocation11], 4294965248  ;;  %s76_s14 = scvt.s32.f32 %s3981_s0  ;;  %v109_v0 = vld [vmem:[#allocation9] sm:$0xff]  ;;  %v110_v2 = vld [vmem:[#allocation9 + $0x8] sm:$0xff]  ;;  %v4003_v43 = vmov 683565275  }
  0x32   :  { %v111_v3 = vld [vmem:[#allocation9 + $0x10] sm:$0xff]  ;;  %v125_v6 = vld [vmem:[#allocation10] sm:$0xff]  ;;  %v126_v7 = vld [vmem:[#allocation10 + $0x8] sm:$0xff]  ;;  %v4000_v45 = vmov 2475754826   ;;  %s2375_s0 = smov [#allocation12]  }
  0x33   :  { %v2435_v1 = vstv %s76_s14  ;;  %v127_v9 = vld [vmem:[#allocation10 + $0x10] sm:$0xff]  ;;  %v112_v17 = vld [vmem:[#allocation9 + $0x18] sm:$0xff]  ;;  %v3998_v47 = vmov 2131351028   ;;  %v3996_v49 = vmov 2102212464  }
  0x34   :  { %v142_v4 = vmul.f32 %v2435_v1, %v109_v0  ;;  %v143_v5 = vmul.f32 %v2435_v1, %v110_v2  ;;  %v144_v8 = vmul.f32 %v2435_v1, %v111_v3  ;;  %v145_v26 = vmul.f32 %v2435_v1, %v112_v17  ;;  %v128_v28 = vld [vmem:[#allocation10 + $0x18] sm:$0xff]  ;;  %s1955_s4 = sshll.u32 %s2375_s0, 4  ;;  %s1956_s4 = int_to_ptr.vmem [resolvable:$true] %s1955_s4 }
  0x35   :  { %v3993_v51 = vmov 920167782   ;;  %v3991_v59 = vmov 1326507024   ;;  %s2335_s15 = scalar_lea.vmem %s1956_s4, 1024  ;;  %p2340_p7 = scmp.lt.s32.totalorder %s1956_s4, %s1956_s4 }
  0x36   :  { %v2440_v10 = vadd.f32 %v142_v4, %v125_v6  ;;  %v2442_v11 = vadd.f32 %v143_v5, %v126_v7  ;;  %v2444_v12 = vadd.f32 %v144_v8, %v127_v9  ;;  %v2456_v34 = vadd.f32 %v145_v26, %v128_v28  ;;  %p2336_p6 = scmp.ne.s32.totalorder %s1956_s4, %s2335_s15  ;;  %p2341_p8 = scmp.lt.s32.totalorder %s2335_s15, %s2335_s15 }
  0x38   :  { %v174_v13 = vand.u32 2147483647, %v2440_v10  ;;  %v177_v14 = vand.u32 2139095040, %v2440_v10  ;;  %v278_v15 = vand.u32 2147483647, %v2442_v11  ;;  %v281_v16 = vand.u32 2139095040, %v2442_v11  ;;  %p2342_p9 = por %p2341_p8, %p2340_p7 }
  0x39   :  { %v385_v22 = vand.u32 2139095040, %v2444_v12 }
  0x3a   :  { %v178_v18 = vshrl.u32 %v177_v14, 23  ;;  %v181_v19 = vand.u32 8388607, %v174_v13  ;;  %v282_v20 = vshrl.u32 %v281_v16, 23  ;;  %v285_v21 = vand.u32 8388607, %v278_v15  ;;  %p2343_p10 = pnand %p2342_p9, %p2336_p6 }
  0x3b   :  { %v386_v25 = vshrl.u32 %v385_v22, 23 }
  0x3c   :  { %v1969_v23 = vadd.s32 4294967169, %v178_v18  ;;  %v1973_v24 = vadd.s32 4294967169, %v282_v20  ;;  %v182_v29 = vor.u32 8388608, %v181_v19  ;;  %v286_v30 = vor.u32 8388608, %v285_v21 }
  0x3d   :  { %v1977_v32 = vadd.s32 4294967169, %v386_v25 }
  0x3e   :  { %v184_v27 = vadd.s32 1, %v1969_v23  ;;  %v288_v31 = vadd.s32 1, %v1973_v24  ;;  %v2458_v38 = vshll.u32 %v182_v29, 8  ;;  %v2460_v40 = vshll.u32 %v286_v30, 8 }
  0x3f   :  { %v2462_v41 = vadd.s32 1, %v1977_v32 }
  0x40   :  { %vm185_vm0 = vcmp.gt.s32.totalorder %v184_v27, 0  ;;  %vm289_vm1 = vcmp.gt.s32.totalorder %v288_v31, 0 }
  0x41   :  { %v186_v33 = vsel %vm185_vm0, %v184_v27, 0  ;;  %v290_v37 = vsel %vm289_vm1, %v288_v31, 0  ;;  %vm393_vm6 = vcmp.gt.s32.totalorder %v2462_v41, 0 }
  0x42   :  { %v187_v35 = vshrl.u32 %v186_v33, 5  ;;  %v188_v36 = vand.u32 31, %v186_v33  ;;  %v292_v39 = vand.u32 31, %v290_v37  ;;  %v2469_v53 = vshrl.u32 %v290_v37, 5 }
  0x44   :  { %v189_v42 = vsub.s32 32, %v188_v36  ;;  %v191_v44 = vshll.u32 %v4003_v43, %v188_v36  ;;  %v194_v46 = vshll.u32 %v4000_v45, %v188_v36  ;;  %v197_v48 = vshll.u32 %v3998_v47, %v188_v36 }
  0x45   :  { %v200_v50 = vshll.u32 %v3996_v49, %v188_v36  ;;  %v203_v52 = vshll.u32 %v3993_v51, %v188_v36  ;;  %vm206_vm2 = vcmp.lt.s32.totalorder %v187_v35, 1  ;;  %vm207_vm3 = vcmp.lt.s32.totalorder %v187_v35, 2 }
  0x46   :  { %v190_v54 = vshrl.u32 %v4003_v43, %v189_v42  ;;  %v192_v55 = vshrl.u32 %v4000_v45, %v189_v42  ;;  %v195_v56 = vshrl.u32 %v3998_v47, %v189_v42  ;;  %v198_v57 = vshrl.u32 %v3996_v49, %v189_v42 }
  0x47   :  { %v201_v58 = vshrl.u32 %v3993_v51, %v189_v42  ;;  %v204_v60 = vshrl.u32 %v3991_v59, %v189_v42  ;;  %vm209_vm4 = vcmp.lt.s32.totalorder %v187_v35, 4  ;;  %v293_v0 = vsub.s32 32, %v292_v39 }
  0x48   :  { %v193_v61 = vor.u32 %v192_v55, %v191_v44  ;;  %v196_v62 = vor.u32 %v195_v56, %v194_v46  ;;  %v199_v63 = vor.u32 %v198_v57, %v197_v48  ;;  %vm208_vm5 = vcmp.lt.s32.totalorder %v187_v35, 3 }
  0x49   :  { %v202_v2 = vor.u32 %v201_v58, %v200_v50  ;;  %v205_v3 = vor.u32 %v204_v60, %v203_v52  ;;  %v295_v4 = vshll.u32 %v4003_v43, %v292_v39  ;;  %v298_v17 = vshll.u32 %v4000_v45, %v292_v39 }
  0x4a   :  { %v210_v5 = vsel %vm206_vm2, %v190_v54, %v193_v61  ;;  %v211_v6 = vsel %vm209_vm4, %v199_v63, 2102212464  ;;  %v214_v7 = vsel %vm206_vm2, %v193_v61, %v196_v62  ;;  %v218_v8 = vsel %vm206_vm2, %v196_v62, %v199_v63 }
  0x4b   :  { %v212_v9 = vsel %vm208_vm5, %v196_v62, %v211_v6  ;;  %v215_v14 = vsel %vm209_vm4, %v202_v2, 920167782  ;;  %v219_v16 = vsel %vm209_vm4, %v205_v3, 1326507024  ;;  %v294_v20 = vshrl.u32 %v4003_v43, %v293_v0 }
  0x4c   :  { %v216_v18 = vsel %vm208_vm5, %v199_v63, %v215_v14  ;;  %v220_v19 = vsel %vm208_vm5, %v202_v2, %v219_v16  ;;  %v296_v21 = vshrl.u32 %v4000_v45, %v293_v0  ;;  %v213_v22 = vsel %vm207_vm3, %v210_v5, %v212_v9 }
  0x4d   :  { %v217_v23 = vsel %vm207_vm3, %v214_v7, %v216_v18  ;;  %v221_v24 = vsel %vm207_vm3, %v218_v8, %v220_v19  ;;  %v299_v25 = vshrl.u32 %v3998_v47, %v293_v0  ;;  %v301_v32 = vshll.u32 %v3998_v47, %v292_v39 }
  0x4e   :  { %v2490_v26 = vmul.u32.u64.low %v2458_v38, %v221_v24  ;;  %v2491_v27 = vmul.u32.u64.high %v2458_v38, %v221_v24, %v2490_v26  ;;  %v2494_v28 = vmul.u32.u64.low %v2458_v38, %v217_v23  ;;  %v2495_v29 = vmul.u32.u64.high %v2458_v38, %v217_v23, %v2494_v28 }
  0x4f   :  { %v297_v30 = vor.u32 %v296_v21, %v295_v4  ;;  %v300_v31 = vor.u32 %v299_v25, %v298_v17  ;;  %v302_v33 = vshrl.u32 %v3996_v49, %v293_v0  ;;  %v304_v35 = vshll.u32 %v3996_v49, %v292_v39 }
  0x50   :  { %v305_v36 = vshrl.u32 %v3993_v51, %v293_v0  ;;  %v307_v37 = vshll.u32 %v3993_v51, %v292_v39  ;;  %v308_v42 = vshrl.u32 %v3991_v59, %v293_v0  ;;  %v229_v44 = vmul.u32 %v2458_v38, %v213_v22 }
  0x51   :  { %v303_v46 = vor.u32 %v302_v33, %v301_v32  ;;  %vm310_vm7 = vcmp.lt.s32.totalorder %v2469_v53, 1  ;;  %vm311_vm8 = vcmp.lt.s32.totalorder %v2469_v53, 2  ;;  %vm231_vm9 = vc.u32 %v2491_v27, %v2494_v28 }
  0x52   :  { %v232_v48 = vadd.s32 1, %v2495_v29  ;;  %v306_v50 = vor.u32 %v305_v36, %v304_v35  ;;  %vm312_vm10 = vcmp.lt.s32.totalorder %v2469_v53, 3  ;;  %v309_v52 = vor.u32 %v308_v42, %v307_v37 }
  0x53   :  { %vm313_vm11 = vcmp.lt.s32.totalorder %v2469_v53, 4  ;;  %v314_v39 = vsel %vm310_vm7, %v294_v20, %v297_v30  ;;  %v318_v54 = vsel %vm310_vm7, %v297_v30, %v300_v31  ;;  %v322_v57 = vsel %vm310_vm7, %v300_v31, %v303_v46 }
  0x54   :  { %v233_v38 = vsel %vm231_vm9, %v232_v48, %v2495_v29  ;;  %v315_v55 = vsel %vm313_vm11, %v303_v46, 2102212464  ;;  %v319_v56 = vsel %vm313_vm11, %v306_v50, 920167782  ;;  %v323_v62 = vsel %vm313_vm11, %v309_v52, 1326507024 }
  0x55   :  { %v234_v58 = vadd.s32 %v233_v38, %v229_v44  ;;  %v316_v60 = vsel %vm312_vm10, %v300_v31, %v315_v55  ;;  %v320_v61 = vsel %vm312_vm10, %v303_v46, %v319_v56  ;;  %v324_v2 = vsel %vm312_vm10, %v306_v50, %v323_v62 }
  0x56   :  { %v317_v63 = vsel %vm311_vm8, %v314_v39, %v316_v60  ;;  %v321_v0 = vsel %vm311_vm8, %v318_v54, %v320_v61  ;;  %v394_v3 = vsel %vm393_vm6, %v2462_v41, 0  ;;  %v325_v5 = vsel %vm311_vm8, %v322_v57, %v324_v2 }
  0x57   :  { %v235_v4 = vadd.s32 536870912, %v234_v58  ;;  %v2523_v6 = vmul.u32.u64.low %v2460_v40, %v321_v0  ;;  %v2524_v7 = vmul.u32.u64.high %v2460_v40, %v321_v0, %v2523_v6  ;;  %v396_v16 = vand.u32 31, %v394_v3 }
  0x58   :  { %v2528_v8 = vmul.u32.u64.low %v2460_v40, %v325_v5  ;;  %v2529_v9 = vmul.u32.u64.high %v2460_v40, %v325_v5, %v2528_v8  ;;  %v333_v17 = vmul.u32 %v2460_v40, %v317_v63  ;;  %v3989_v41 = vand.u32 2147483647, %v2444_v12 }
  0x59   :  { %v2531_v14 = vshrl.u32 %v235_v4, 30  ;;  %v489_v18 = vand.u32 2139095040, %v2456_v34  ;;  %v336_v53 = vadd.s32 1, %v2524_v7  ;;  %v397_v19 = vsub.s32 32, %v396_v16 }
  0x5a   :  { %vm335_vm12 = vc.u32 %v2529_v9, %v2523_v6  ;;  %v389_v23 = vand.u32 8388607, %v3989_v41  ;;  %v395_v24 = vshrl.u32 %v394_v3, 5  ;;  %v399_v25 = vshll.u32 %v4003_v43, %v396_v16 }
  0x5b   :  { %v237_v20 = vshll.u32 %v2531_v14, 30  ;;  %v337_v21 = vsel %vm335_vm12, %v336_v53, %v2524_v7  ;;  %v490_v40 = vshrl.u32 %v489_v18, 23  ;;  %v400_v26 = vshrl.u32 %v4000_v45, %v397_v19 }
  0x5c   :  { %v338_v22 = vadd.s32 %v337_v21, %v333_v17  ;;  %v402_v29 = vshll.u32 %v4000_v45, %v396_v16  ;;  %v403_v30 = vshrl.u32 %v3998_v47, %v397_v19  ;;  %v405_v32 = vshll.u32 %v3998_v47, %v396_v16 }
  0x5d   :  { %v406_v33 = vshrl.u32 %v3996_v49, %v397_v19  ;;  %v408_v35 = vshll.u32 %v3996_v49, %v396_v16  ;;  %v2550_v36 = vsub.s32 %v234_v58, %v237_v20  ;;  %v409_v37 = vshrl.u32 %v3993_v51, %v397_v19 }
  0x5e   :  { %v339_v31 = vadd.s32 536870912, %v338_v22  ;;  %v411_v44 = vshll.u32 %v3993_v51, %v396_v16  ;;  %v412_v46 = vshrl.u32 %v3991_v59, %v397_v19  ;;  %v390_v48 = vor.u32 8388608, %v389_v23 }
  0x5f   :  { %v401_v50 = vor.u32 %v400_v26, %v399_v25  ;;  %vm417_vm13 = vcmp.lt.s32.totalorder %v395_v24, 4  ;;  %v1981_v52 = vadd.s32 4294967169, %v490_v40  ;;  %v404_v54 = vor.u32 %v403_v30, %v402_v29 }
  0x60   :  { %v2553_v42 = vshrl.u32 %v339_v31, 30  ;;  %v407_v38 = vor.u32 %v406_v33, %v405_v32  ;;  %v410_v55 = vor.u32 %v409_v37, %v408_v35  ;;  %v240_v56 = vsub.s32 0, %v2550_v36  ;;  %v113_v32 = vld [vmem:[#allocation9 + $0x20] sm:$0xff]  ;;  %v114_v33 = vld [vmem:[#allocation9 + $0x28] sm:$0xff] }
  0x61   :  { %v413_v57 = vor.u32 %v412_v46, %v411_v44  ;;  %vm414_vm14 = vcmp.lt.s32.totalorder %v395_v24, 1  ;;  %vm416_vm15 = vcmp.lt.s32.totalorder %v395_v24, 3  ;;  %v398_v60 = vshrl.u32 %v4003_v43, %v397_v19  ;;  %v115_v46 = vld [vmem:[#allocation9 + $0x30] sm:$0xff] }
  0x62   :  { %v341_v39 = vshll.u32 %v2553_v42, 30  ;;  %v423_v61 = vsel %vm417_vm13, %v410_v55, 920167782  ;;  %vm415_vm0 = vcmp.lt.s32.totalorder %v395_v24, 2  ;;  %v496_v62 = vadd.s32 1, %v1981_v52 }
  0x63   :  { %v419_v63 = vsel %vm417_vm13, %v407_v38, 2102212464  ;;  %v422_v0 = vsel %vm414_vm14, %v401_v50, %v404_v54  ;;  %v424_v2 = vsel %vm416_vm15, %v407_v38, %v423_v61  ;;  %v426_v3 = vsel %vm414_vm14, %v404_v54, %v407_v38 }
  0x64   :  { %v2559_v58 = vsub.s32 %v338_v22, %v341_v39  ;;  %v1970_v4 = vmin.u32 %v240_v56, %v2550_v36  ;;  %v427_v7 = vsel %vm417_vm13, %v413_v57, 1326507024  ;;  %v430_v8 = vshll.u32 %v390_v48, 8 }
  0x65   :  { %v418_v16 = vsel %vm414_vm14, %v398_v60, %v401_v50  ;;  %v428_v17 = vsel %vm416_vm15, %v410_v55, %v427_v7  ;;  %v420_v18 = vsel %vm416_vm15, %v404_v54, %v419_v63  ;;  %v425_v53 = vsel %vm415_vm0, %v422_v0, %v424_v2  ;;  %v116_v50 = vld [vmem:[#allocation9 + $0x38] sm:$0xff]  ;;  %v117_v55 = vld [vmem:[#allocation9 + $0x40] sm:$0xff]  ;;  %v118_v7 = vld [vmem:[#allocation9 + $0x48] sm:$0xff] }
  0x66   :  { %v344_v5 = vsub.s32 0, %v2559_v58  ;;  %v429_v19 = vsel %vm415_vm0, %v426_v3, %v428_v17  ;;  %vm497_vm1 = vcmp.gt.s32.totalorder %v496_v62, 0  ;;  %v242_v20 = vclz %v1970_v4 }
  0x67   :  { %v2573_v22 = vmul.u32.u64.low %v430_v8, %v429_v19  ;;  %v2574_v23 = vmul.u32.u64.high %v430_v8, %v429_v19, %v2573_v22  ;;  %v421_v40 = vsel %vm415_vm0, %v418_v16, %v420_v18  ;;  %v498_v29 = vsel %vm497_vm1, %v496_v62, 0 }
  0x68   :  { %v1974_v21 = vmin.u32 %v344_v5, %v2559_v58  ;;  %v2577_v25 = vmul.u32.u64.low %v430_v8, %v425_v53  ;;  %v2578_v26 = vmul.u32.u64.high %v430_v8, %v425_v53, %v2577_v25  ;;  %v500_v30 = vand.u32 31, %v498_v29 }
  0x69   :  { %v3988_v31 = vand.u32 2147483647, %v2456_v34  ;;  %v1971_v35 = vadd.s32 4294967294, %v242_v20  ;;  %v437_v44 = vmul.u32 %v430_v8, %v421_v40  ;;  %v146_v52 = vmul.f32 %v2435_v1, %v113_v32  ;;  %v119_v8 = vld [vmem:[#allocation9 + $0x50] sm:$0xff] }
  0x6a   :  { %v346_v37 = vclz %v1974_v21  ;;  %vm439_vm2 = vc.u32 %v2574_v23, %v2577_v25  ;;  %v440_v24 = vadd.s32 1, %v2578_v26  ;;  %v501_v48 = vsub.s32 32, %v500_v30 }
  0x6b   :  { %v2587_v39 = vmul.f32 %v2435_v1, %v114_v33  ;;  %v493_v38 = vand.u32 8388607, %v3988_v31  ;;  %v2593_v56 = vmul.f32 %v2435_v1, %v115_v46  ;;  %vm1972_vm3 = vcmp.lt.s32.totalorder %v1971_v35, 0 }
  0x6c   :  { %v441_v54 = vsel %vm439_vm2, %v440_v24, %v2578_v26  ;;  %v1975_v57 = vadd.s32 4294967294, %v346_v37  ;;  %v503_v61 = vshll.u32 %v4003_v43, %v500_v30  ;;  %v504_v62 = vshrl.u32 %v4000_v45, %v501_v48 }
  0x6d   :  { %v442_v60 = vadd.s32 %v441_v54, %v437_v44  ;;  %v506_v63 = vshll.u32 %v4000_v45, %v500_v30  ;;  %v507_v0 = vshrl.u32 %v3998_v47, %v501_v48  ;;  %v2600_v2 = vmul.f32 %v2435_v1, %v116_v50  ;;  %v129_v44 = vld [vmem:[#allocation10 + $0x20] sm:$0xff] }
  0x6e   :  { %v2602_v4 = vshrl.u32 %v498_v29, 5  ;;  %v512_v5 = vshll.u32 %v3996_v49, %v500_v30  ;;  %v2606_v16 = vmul.f32 %v2435_v1, %v117_v55  ;;  %v494_v17 = vor.u32 8388608, %v493_v38 }
  0x6f   :  { %v443_v3 = vadd.s32 536870912, %v442_v60  ;;  %v509_v18 = vshll.u32 %v3998_v47, %v500_v30  ;;  %v510_v53 = vshrl.u32 %v3996_v49, %v501_v48  ;;  %v2611_v19 = vsel %vm1972_vm3, 0, %v1971_v35  ;;  %v120_v35 = vld [vmem:[#allocation9 + $0x58] sm:$0xff] }
  0x70   :  { %vm1976_vm4 = vcmp.lt.s32.totalorder %v1975_v57, 0  ;;  %v513_v21 = vshrl.u32 %v3993_v51, %v501_v48  ;;  %v505_v22 = vor.u32 %v504_v62, %v503_v61  ;;  %v508_v40 = vor.u32 %v507_v0, %v506_v63 }
  0x71   :  { %v2613_v20 = vshrl.u32 %v443_v3, 30  ;;  %v515_v26 = vshll.u32 %v3993_v51, %v500_v30  ;;  %v516_v29 = vshrl.u32 %v3991_v59, %v501_v48  ;;  %v2619_v32 = vmul.f32 %v2435_v1, %v118_v7  ;;  %v121_v3 = vld [vmem:[#allocation9 + $0x60] sm:$0xff] }
  0x72   :  { %v2622_v33 = vmul.f32 %v2435_v1, %v119_v8  ;;  %v514_v37 = vor.u32 %v513_v21, %v512_v5  ;;  %vm518_vm5 = vcmp.lt.s32.totalorder %v2602_v4, 1  ;;  %v250_v46 = vsub.s32 4294967266, %v2611_v19 }
  0x73   :  { %v2626_v24 = vsel %vm1976_vm4, 0, %v1975_v57  ;;  %v511_v50 = vor.u32 %v510_v53, %v509_v18  ;;  %v2628_v54 = vshll.u32 %v494_v17, 8  ;;  %v445_v30 = vshll.u32 %v2613_v20, 30 }
  0x74   :  { %v502_v38 = vshrl.u32 %v4003_v43, %v501_v48  ;;  %vm520_vm6 = vcmp.lt.s32.totalorder %v2602_v4, 3  ;;  %vm521_vm7 = vcmp.lt.s32.totalorder %v2602_v4, 4  ;;  %v517_v55 = vor.u32 %v516_v29, %v515_v26 }
  0x75   :  { %vm519_vm8 = vcmp.lt.s32.totalorder %v2602_v4, 2  ;;  %v523_v61 = vsel %vm521_vm7, %v511_v50, 2102212464  ;;  %v526_v57 = vsel %vm518_vm5, %v505_v22, %v508_v40  ;;  %v2640_v62 = vmul.f32 %v2435_v1, %v120_v35  ;;  %v130_v4 = vld [vmem:[#allocation10 + $0x28] sm:$0xff] }
  0x76   :  { %v2642_v63 = vadd.f32 %v146_v52, %v129_v44  ;;  %v230_v48 = vadd.s32 %v2494_v28, %v2491_v27  ;;  %v527_v0 = vsel %vm521_vm7, %v514_v37, 920167782  ;;  %v246_v5 = vsub.s32 32, %v2611_v19 }
  0x77   :  { %v251_v7 = vadd.s32 127, %v250_v46  ;;  %v354_v8 = vsub.s32 4294967266, %v2626_v24  ;;  %v528_v17 = vsel %vm520_vm6, %v511_v50, %v527_v0  ;;  %v2652_v18 = vsub.s32 %v442_v60, %v445_v30  ;;  %v122_v60 = vld [vmem:[#allocation9 + $0x68] sm:$0xff]  ;;  %v123_v46 = vld [vmem:[#allocation9 + $0x70] sm:$0xff]  ;;  %v124_v0 = vld [vmem:[#allocation9 + $0x78] sm:$0xff] }
  0x78   :  { %v522_v52 = vsel %vm518_vm5, %v502_v38, %v505_v22  ;;  %v524_v27 = vsel %vm520_vm6, %v508_v40, %v523_v61  ;;  %v529_v28 = vsel %vm519_vm8, %v526_v57, %v528_v17  ;;  %v530_v53 = vsel %vm518_vm5, %v508_v40, %v511_v50 }
  0x79   :  { %v531_v21 = vsel %vm521_vm7, %v517_v55, 1326507024  ;;  %v2665_v26 = vmul.u32.u64.low %v2628_v54, %v529_v28  ;;  %v2666_v29 = vmul.u32.u64.high %v2628_v54, %v529_v28, %v2665_v26  ;;  %v2670_v22 = vmul.f32 %v2435_v1, %v121_v3 }
  0x7a   :  { %v247_v35 = vshll.u32 %v2550_v36, %v2611_v19  ;;  %v260_v44 = vsub.s32 4, %v2531_v14  ;;  %v334_v40 = vadd.s32 %v2523_v6, %v2529_v9  ;;  %v248_v50 = vshrl.u32 %v230_v48, %v246_v5 }
  0x7b   :  { %v252_v30 = vshll.u32 %v251_v7, 23  ;;  %v350_v38 = vsub.s32 32, %v2626_v24  ;;  %v532_v55 = vsel %vm520_vm6, %v514_v37, %v531_v21  ;;  %v355_v61 = vadd.s32 127, %v354_v8  ;;  %v131_v8 = vld [vmem:[#allocation10 + $0x30] sm:$0xff] }
  0x7c   :  { %v525_v57 = vsel %vm519_vm8, %v522_v52, %v524_v27  ;;  %v533_v36 = vsel %vm519_vm8, %v530_v53, %v532_v55  ;;  %v593_v19 = vand.u32 2139095040, %v2642_v63  ;;  %v155_v6 = vmul.f32 %v2435_v1, %v122_v60  ;;  %v132_v55 = vld [vmem:[#allocation10 + $0x38] sm:$0xff] }
  0x7d   :  { %v448_v9 = vsub.s32 0, %v2652_v18  ;;  %v2688_v48 = vmul.u32.u64.low %v2628_v54, %v533_v36  ;;  %v2689_v3 = vmul.u32.u64.high %v2628_v54, %v533_v36, %v2688_v48  ;;  %v156_v37 = vmul.f32 %v2435_v1, %v123_v46  ;;  %v133_v36 = vld [vmem:[#allocation10 + $0x40] sm:$0xff] }
  0x7e   :  { %vm176_vm9 = vcmp.lt.s32.totalorder %v2440_v10, 0  ;;  %v544_v5 = vadd.s32 1, %v2666_v29  ;;  %v594_v7 = vshrl.u32 %v593_v19, 23  ;;  %v249_v17 = vor.u32 %v248_v50, %v247_v35 }
  0x7f   :  { %v253_v52 = vor.u32 4788187, %v252_v30  ;;  %v261_v27 = vsel %vm176_vm9, %v260_v44, %v2531_v14  ;;  %v541_v28 = vmul.u32 %v2628_v54, %v525_v57  ;;  %v2699_v53 = vmul.f32 %v2435_v1, %v124_v0  ;;  %v134_v54 = vld [vmem:[#allocation10 + $0x48] sm:$0xff] }
  0x80   :  { %v351_v21 = vshll.u32 %v2559_v58, %v2626_v24  ;;  %v352_v60 = vshrl.u32 %v334_v40, %v350_v38  ;;  %v356_v46 = vshll.u32 %v355_v61, 23  ;;  %vm2705_vm10 = vcmp.le.f32.partialorder %v174_v13, 0.7853982  ;;  %v135_v40 = vld [vmem:[#allocation10 + $0x50] sm:$0xff] }
  0x81   :  { %v1978_v14 = vmin.u32 %v448_v9, %v2652_v18  ;;  %vm543_vm11 = vc.u32 %v2689_v3, %v2665_v26  ;;  %v1985_v1 = vadd.s32 4294967169, %v594_v7  ;;  %v2713_v44 = vadd.f32 %v2587_v39, %v130_v4  ;;  %v137_v9 = vld [vmem:[#allocation10 + $0x60] sm:$0xff] }
  0x82   :  { %v2716_v58 = vadd.f32 %v2593_v56, %v131_v8  ;;  %v263_v24 = vsel %vm2705_vm10, 0, %v261_v27  ;;  %v545_v13 = vsel %vm543_vm11, %v544_v5, %v2666_v29  ;;  %v254_v50 = vand.u32 2147483647, %v253_v52  ;;  %v136_v56 = vld [vmem:[#allocation10 + $0x58] sm:$0xff]  ;;  %v138_v5 = vld [vmem:[#allocation10 + $0x68] sm:$0xff] }
  0x83   :  { %v256_v30 = vcvt.s32.f32 %v249_v17  ;;  %v546_v38 = vadd.s32 %v545_v13, %v541_v28  ;;  %v600_v61 = vadd.s32 1, %v1985_v1  ;;  %v2722_v57 = vadd.f32 %v2600_v2, %v132_v55 }
  0x84   :  { %v2725_v19 = vadd.f32 %v2606_v16, %v133_v36  ;;  %v353_v39 = vor.u32 %v352_v60, %v351_v21  ;;  %v357_v0 = vor.u32 4788187, %v356_v46  ;;  %v2728_v48 = vadd.f32 %v2619_v32, %v134_v54  ;;  %v139_v16 = vld [vmem:[#allocation10 + $0x70] sm:$0xff] }
  0x85   :  { %v450_v7 = vclz %v1978_v14  ;;  %v547_v29 = vadd.s32 536870912, %v546_v38  ;;  %vm601_vm12 = vcmp.gt.s32.totalorder %v600_v61, 0  ;;  %v2731_v4 = vadd.f32 %v2622_v33, %v135_v40 }
  0x86   :  { %v267_v8 = vadd.s32 3, %v263_v24  ;;  %v364_v2 = vsub.s32 4, %v2553_v42  ;;  %v602_v17 = vsel %vm601_vm12, %v600_v61, 0  ;;  %v257_v52 = vmul.f32 %v256_v30, %v254_v50 }
  0x87   :  { %v2734_v27 = vshrl.u32 %v547_v29, 30  ;;  %v3987_v28 = vand.u32 2147483647, %v2642_v63  ;;  %v604_v21 = vand.u32 31, %v602_v17  ;;  %v2738_v32 = vadd.f32 %v2640_v62, %v136_v56 }
  0x88   :  { %v2741_v60 = vadd.f32 %v2670_v22, %v137_v9  ;;  %v358_v46 = vand.u32 2147483647, %v357_v0  ;;  %v360_v33 = vcvt.s32.f32 %v353_v39  ;;  %v2743_v55 = vadd.f32 %v155_v6, %v138_v5 }
  0x89   :  { %v1979_v36 = vadd.s32 4294967294, %v450_v7  ;;  %v549_v14 = vshll.u32 %v2734_v27, 30  ;;  %v605_v1 = vsub.s32 32, %v604_v21  ;;  %v2746_v54 = vadd.f32 %v156_v37, %v139_v16 }
  0x8a   :  { %v2748_v24 = vand.u32 3, %v267_v8  ;;  %vm2752_vm13 = vcmp.le.f32.partialorder %v278_v15, 0.7853982  ;;  %vm280_vm14 = vcmp.lt.s32.totalorder %v2442_v11, 0  ;;  %v258_v22 = vxor.u32 2147483648, %v257_v52 }
  0x8b   :  { %v365_v6 = vsel %vm280_vm14, %v364_v2, %v2553_v42  ;;  %v2760_v13 = vsub.s32 %v546_v38, %v549_v14  ;;  %v597_v37 = vand.u32 8388607, %v3987_v28  ;;  %v361_v40 = vmul.f32 %v360_v33, %v358_v46 }
  0x8c   :  { %v607_v50 = vshll.u32 %v4003_v43, %v604_v21  ;;  %v608_v15 = vshrl.u32 %v4000_v45, %v605_v1  ;;  %v610_v30 = vshll.u32 %v4000_v45, %v604_v21  ;;  %vm1980_vm15 = vcmp.lt.s32.totalorder %v1979_v36, 0 }
  0x8d   :  { %v552_v61 = vsub.s32 0, %v2760_v13  ;;  %v611_v39 = vshrl.u32 %v3998_v47, %v605_v1  ;;  %v697_v0 = vand.u32 2139095040, %v2713_v44  ;;  %v603_v42 = vshrl.u32 %v602_v17, 5 }
  0x8e   :  { %v613_v38 = vshll.u32 %v3998_v47, %v604_v21  ;;  %v614_v56 = vshrl.u32 %v3996_v49, %v605_v1  ;;  %v616_v9 = vshll.u32 %v3996_v49, %v604_v21  ;;  %v259_v7 = vsel %vm176_vm9, %v258_v22, %v257_v52 }
  0x8f   :  { %v367_v29 = vsel %vm2752_vm13, 0, %v365_v6  ;;  %v1982_v5 = vmin.u32 %v552_v61, %v2760_v13  ;;  %v598_v8 = vor.u32 8388608, %v597_v37  ;;  %v609_v2 = vor.u32 %v608_v15, %v607_v50 }
  0x90   :  { %v612_v16 = vor.u32 %v611_v39, %v610_v30  ;;  %v617_v46 = vshrl.u32 %v3993_v51, %v605_v1  ;;  %v619_v17 = vshll.u32 %v3993_v51, %v604_v21  ;;  %v362_v33 = vxor.u32 2147483648, %v361_v40 }
  0x91   :  { %v2781_v14 = vsel %vm1980_vm15, 0, %v1979_v36  ;;  %v606_v28 = vshrl.u32 %v4003_v43, %v605_v1  ;;  %v698_v31 = vshrl.u32 %v697_v0, 23  ;;  %v615_v52 = vor.u32 %v614_v56, %v613_v38 }
  0x92   :  { %v618_v22 = vor.u32 %v617_v46, %v616_v9  ;;  %v620_v6 = vshrl.u32 %v3991_v59, %v605_v1  ;;  %vm622_vm0 = vcmp.lt.s32.totalorder %v603_v42, 1  ;;  %v554_v61 = vclz %v1982_v5 }
  0x93   :  { %vm624_vm1 = vcmp.lt.s32.totalorder %v603_v42, 3  ;;  %vm625_vm2 = vcmp.lt.s32.totalorder %v603_v42, 4  ;;  %v638_v37 = vshll.u32 %v598_v8, 8  ;;  %vm623_vm3 = vcmp.lt.s32.totalorder %v603_v42, 2 }
  0x94   :  { %v621_v50 = vor.u32 %v620_v6, %v619_v17  ;;  %v627_v15 = vsel %vm625_vm2, %v615_v52, 2102212464  ;;  %v630_v21 = vsel %vm622_vm0, %v609_v2, %v612_v16  ;;  %v458_v30 = vsub.s32 4294967266, %v2781_v14 }
  0x95   :  { %v626_v36 = vsel %vm622_vm0, %v606_v28, %v609_v2  ;;  %v631_v39 = vsel %vm625_vm2, %v618_v22, 920167782  ;;  %v1989_v41 = vadd.s32 4294967169, %v698_v31  ;;  %v628_v0 = vsel %vm624_vm1, %v612_v16, %v627_v15 }
  0x96   :  { %v632_v38 = vsel %vm624_vm1, %v615_v52, %v631_v39  ;;  %v634_v56 = vsel %vm622_vm0, %v612_v16, %v615_v52  ;;  %v635_v1 = vsel %vm625_vm2, %v621_v50, 1326507024  ;;  %v262_v9 = vsel %vm2705_vm10, %v2440_v10, %v259_v7 }
  0x97   :  { %v363_v5 = vsel %vm280_vm14, %v362_v33, %v361_v40  ;;  %v438_v8 = vadd.s32 %v2577_v25, %v2574_v23  ;;  %v633_v28 = vsel %vm623_vm3, %v630_v21, %v632_v38  ;;  %v1983_v2 = vadd.s32 4294967294, %v554_v61 }
  0x98   :  { %v636_v31 = vsel %vm624_vm1, %v618_v22, %v635_v1  ;;  %v2797_v46 = vmul.u32.u64.low %v638_v37, %v633_v28  ;;  %v2798_v17 = vmul.u32.u64.high %v638_v37, %v633_v28, %v2797_v46  ;;  %v454_v16 = vsub.s32 32, %v2781_v14 }
  0x99   :  { %v629_v35 = vsel %vm623_vm3, %v626_v36, %v628_v0  ;;  %v637_v7 = vsel %vm623_vm3, %v634_v56, %v636_v31  ;;  %v704_v52 = vadd.s32 1, %v1989_v41  ;;  %v371_v40 = vadd.s32 3, %v367_v29 }
  0x9a   :  { %v459_v33 = vadd.s32 127, %v458_v30  ;;  %v2804_v6 = vmul.u32.u64.low %v638_v37, %v637_v7  ;;  %v2805_v23 = vmul.u32.u64.high %v638_v37, %v637_v7, %v2804_v6  ;;  %2191 = vcosq.f32 %v262_v9 }
  0x9b   :  { %v366_v25 = vsel %vm2752_vm13, %v2442_v11, %v363_v5  ;;  %v3990_v22 = vand.u32 2147483647, %v2713_v44  ;;  %vm705_vm4 = vcmp.gt.s32.totalorder %v704_v52, 0  ;;  %vm1984_vm5 = vcmp.lt.s32.totalorder %v1983_v2, 0 }
  0x9c   :  { %v645_v61 = vmul.u32 %v638_v37, %v629_v35  ;;  %v648_v50 = vadd.s32 1, %v2798_v17  ;;  %v706_v42 = vsel %vm705_vm4, %v704_v52, 0  ;;  %2193 = vsinq.f32 %v262_v9 }
  0x9d   :  { %v455_v41 = vshll.u32 %v2652_v18, %v2781_v14  ;;  %v456_v29 = vshrl.u32 %v438_v8, %v454_v16  ;;  %v708_v15 = vand.u32 31, %v706_v42  ;;  %2195 = vcosq.f32 %v366_v25 }
  0x9e   :  { %v2814_v21 = vand.u32 3, %v371_v40  ;;  %v460_v30 = vshll.u32 %v459_v33, 23  ;;  %vm647_vm6 = vc.u32 %v2805_v23, %v2797_v46  ;;  %v2818_v62 = vsel %vm1984_vm5, 0, %v1983_v2 }
  0x9f   :  { %v649_v37 = vsel %vm647_vm6, %v648_v50, %v2798_v17  ;;  %v701_v36 = vand.u32 8388607, %v3990_v22  ;;  %v709_v39 = vsub.s32 32, %v708_v15  ;;  %2197 = vsinq.f32 %v366_v25 }
  0xa0   :  { %v468_v18 = vsub.s32 4, %v2613_v20  ;;  %v542_v14 = vadd.s32 %v2665_v26, %v2689_v3  ;;  %v650_v0 = vadd.s32 %v649_v37, %v645_v61  ;;  %v2826_v38 = vor.u32 %v456_v29, %v455_v41 }
  0xa1   :  { %v711_v56 = vshll.u32 %v4003_v43, %v708_v15  ;;  %v712_v1 = vshrl.u32 %v4000_v45, %v709_v39  ;;  %v714_v9 = vshll.u32 %v4000_v45, %v708_v15  ;;  %vm384_vm7 = vcmp.lt.s32.totalorder %v2444_v12, 0 }
  0xa2   :  { %v2832_v5 = vor.u32 4788187, %v460_v30  ;;  %v562_v8 = vsub.s32 4294967266, %v2818_v62  ;;  %v651_v28 = vadd.s32 536870912, %v650_v0  ;;  %v715_v2 = vshrl.u32 %v3998_v47, %v709_v39 }
  0xa3   :  { %v702_v31 = vor.u32 8388608, %v701_v36  ;;  %v707_v26 = vshrl.u32 %v706_v42, 5  ;;  %v717_v3 = vshll.u32 %v3998_v47, %v708_v15  ;;  %v718_v17 = vshrl.u32 %v3996_v49, %v709_v39 }
  0xa4   :  { %v558_v16 = vsub.s32 32, %v2818_v62  ;;  %v2839_v35 = vshrl.u32 %v651_v28, 30  ;;  %v720_v7 = vshll.u32 %v3996_v49, %v708_v15  ;;  %v721_v52 = vshrl.u32 %v3993_v51, %v709_v39 }
  0xa5   :  { %v713_v40 = vor.u32 %v712_v1, %v711_v56  ;;  %v716_v33 = vor.u32 %v715_v2, %v714_v9  ;;  %v723_v6 = vshll.u32 %v3993_v51, %v708_v15  ;;  %v724_v25 = vshrl.u32 %v3991_v59, %v709_v39 }
  0xa6   :  { %v4012_v61 = vand.u32 2147483647, %v2444_v12  ;;  %v559_v42 = vshll.u32 %v2760_v13, %v2818_v62  ;;  %v563_v41 = vadd.s32 127, %v562_v8  ;;  %v653_v29 = vshll.u32 %v2839_v35, 30 }
  0xa7   :  { %v722_v30 = vor.u32 %v721_v52, %v720_v7  ;;  %v719_v37 = vor.u32 %v718_v17, %v717_v3  ;;  %v725_v36 = vor.u32 %v724_v25, %v723_v6  ;;  %vm726_vm9 = vcmp.lt.s32.totalorder %v707_v26, 1  ;;  %v2855_v56 = vpop.eup %2191  ;;  %v140_v6 = vld [vmem:[#allocation10 + $0x78] sm:$0xff] }
  0xa8   :  { %vm2847_vm8 = vcmp.le.f32.partialorder %v4012_v61, 0.7853982  ;;  %v801_v15 = vand.u32 2139095040, %v2716_v58  ;;  %v560_v1 = vshrl.u32 %v542_v14, %v558_v16  ;;  %v2857_v9 = vsub.s32 %v650_v0, %v653_v29 }
  0xa9   :  { %v710_v28 = vshrl.u32 %v4003_v43, %v709_v39  ;;  %vm728_vm10 = vcmp.lt.s32.totalorder %v707_v26, 3  ;;  %vm727_vm11 = vcmp.lt.s32.totalorder %v707_v26, 2  ;;  %vm729_vm12 = vcmp.lt.s32.totalorder %v707_v26, 4  ;;  %v2194_v8 = vpop.eup %2193 }
  0xaa   :  { %v734_v13 = vsel %vm726_vm9, %v713_v40, %v716_v33  ;;  %v742_v62 = vshll.u32 %v702_v31, 8  ;;  %v564_v2 = vshll.u32 %v563_v41, 23  ;;  %v656_v3 = vsub.s32 0, %v2857_v9  ;;  %v2196_v52 = vpop.eup %2195 }
  0xab   :  { %v731_v17 = vsel %vm729_vm12, %v719_v37, 2102212464  ;;  %v735_v7 = vsel %vm729_vm12, %v722_v30, 920167782  ;;  %v469_v14 = vsel %vm384_vm7, %v468_v18, %v2613_v20  ;;  %v739_v39 = vsel %vm729_vm12, %v725_v36, 1326507024 }
  0xac   :  { %v736_v0 = vsel %vm728_vm10, %v719_v37, %v735_v7  ;;  %v802_v16 = vshrl.u32 %v801_v15, 23  ;;  %v1986_v25 = vmin.u32 %v656_v3, %v2857_v9  ;;  %v730_v31 = vsel %vm726_vm9, %v710_v28, %v713_v40  ;;  %v2198_v29 = vpop.eup %2197 }
  0xad   :  { %v737_v61 = vsel %vm727_vm11, %v734_v13, %v736_v0  ;;  %v738_v41 = vsel %vm726_vm9, %v716_v33, %v719_v37  ;;  %v732_v22 = vsel %vm728_vm10, %v716_v33, %v731_v17  ;;  %v740_v59 = vsel %vm728_vm10, %v722_v30, %v739_v39 }
  0xae   :  { %v2872_v51 = vmul.u32.u64.low %v742_v62, %v737_v61  ;;  %v2873_v20 = vmul.u32.u64.high %v742_v62, %v737_v61, %v2872_v51  ;;  %v462_v18 = vand.u32 2147483647, %v2832_v5  ;;  %v464_v36 = vcvt.s32.f32 %v2826_v38 }
  0xaf   :  { %v561_v15 = vor.u32 %v560_v1, %v559_v42  ;;  %v565_v3 = vor.u32 4788187, %v564_v2  ;;  %v2879_v40 = vadd.f32 %v2699_v53, %v140_v6  ;;  %v471_v37 = vsel %vm2847_vm8, 0, %v469_v14 }
  0xb0   :  { %v741_v33 = vsel %vm727_vm11, %v738_v41, %v740_v59  ;;  %v1993_v28 = vadd.s32 4294967169, %v802_v16  ;;  %v658_v30 = vclz %v1986_v25  ;;  %v733_v13 = vsel %vm727_vm11, %v730_v31, %v732_v22 }
  0xb1   :  { %4015 = vst [vmem:[#allocation17_spill] sm:$0xff] %v2879_v40  ;;  %v2885_v17 = vmul.u32.u64.low %v742_v62, %v741_v33  ;;  %v2886_v7 = vmul.u32.u64.high %v742_v62, %v741_v33, %v2885_v17  ;;  %vm270_vm13 = vcmp.eq.s32.totalorder %v2748_v24, 0  ;;  %vm273_vm14 = vcmp.eq.s32.totalorder %v2748_v24, 2 }
  0xb2   :  { %vm374_vm15 = vcmp.eq.s32.totalorder %v2814_v21, 0  ;;  %v808_v53 = vadd.s32 1, %v1993_v28  ;;  %v465_v38 = vmul.f32 %v464_v36, %v462_v18  ;;  %v566_v5 = vand.u32 2147483647, %v565_v3 }
  0xb3   :  { %v568_v42 = vcvt.s32.f32 %v561_v15  ;;  %v752_v1 = vadd.s32 1, %v2873_v20  ;;  %vm377_vm0 = vcmp.eq.s32.totalorder %v2814_v21, 2  ;;  %v475_v59 = vadd.s32 3, %v471_v37 }
  0xb4   :  { %v749_v26 = vmul.u32 %v742_v62, %v733_v13  ;;  %vm809_vm1 = vcmp.gt.s32.totalorder %v808_v53, 0  ;;  %v271_v22 = vxor.u32 2147483648, %v2194_v8  ;;  %v274_v2 = vxor.u32 2147483648, %v2855_v56 }
  0xb5   :  { %v378_v14 = vxor.u32 2147483648, %v2196_v52  ;;  %v1987_v0 = vadd.s32 4294967294, %v658_v30  ;;  %v375_v39 = vxor.u32 2147483648, %v2198_v29  ;;  %v572_v16 = vsub.s32 4, %v2734_v27 }
  0xb6   :  { %vm751_vm2 = vc.u32 %v2886_v7, %v2872_v51  ;;  %v810_v6 = vsel %vm809_vm1, %v808_v53, 0  ;;  %v466_v25 = vxor.u32 2147483648, %v465_v38  ;;  %v569_v31 = vmul.f32 %v568_v42, %v566_v5 }
  0xb7   :  { %v753_v61 = vsel %vm751_vm2, %v752_v1, %v2873_v20  ;;  %v3995_v41 = vand.u32 2147483647, %v2716_v58  ;;  %v2899_v62 = vand.u32 3, %v475_v59  ;;  %vm488_vm3 = vcmp.lt.s32.totalorder %v2456_v34, 0 }
  0xb8   :  { %v754_v18 = vadd.s32 %v753_v61, %v749_v26  ;;  %v812_v36 = vand.u32 31, %v810_v6  ;;  %v2905_v15 = vsel %vm270_vm13, %v2855_v56, %v271_v22  ;;  %v2909_v3 = vsel %vm273_vm14, %v274_v2, %v2194_v8 }
  0xb9   :  { %v2913_v20 = vsel %vm377_vm0, %v378_v14, %v2198_v29  ;;  %vm1988_vm4 = vcmp.lt.s32.totalorder %v1987_v0, 0  ;;  %v2917_v37 = vsel %vm374_vm15, %v2196_v52, %v375_v39  ;;  %v2922_v33 = vsel %vm488_vm3, %v572_v16, %v2734_v27 }
  0xba   :  { %v755_v56 = vadd.s32 536870912, %v754_v18  ;;  %v813_v28 = vsub.s32 32, %v812_v36  ;;  %v2926_v8 = vsel %vm384_vm7, %v466_v25, %v465_v38  ;;  %v570_v30 = vxor.u32 2147483648, %v569_v31 }
  0xbb   :  { %v646_v29 = vadd.s32 %v2797_v46, %v2805_v23  ;;  %v805_v13 = vand.u32 8388607, %v3995_v41  ;;  %v2932_v52 = vsel %vm1988_vm4, 0, %v1987_v0  ;;  %v815_v27 = vshll.u32 %v4003_v43, %v812_v36 }
  0xbc   :  { %v2934_v17 = vshrl.u32 %v755_v56, 30  ;;  %v905_v53 = vand.u32 2139095040, %v2722_v57  ;;  %v816_v5 = vshrl.u32 %v4000_v45, %v813_v28  ;;  %v818_v38 = vshll.u32 %v4000_v45, %v812_v36 }
  0xbd   :  { %v819_v42 = vshrl.u32 %v3998_v47, %v813_v28  ;;  %v824_v1 = vshll.u32 %v3996_v49, %v812_v36  ;;  %v811_v23 = vshrl.u32 %v810_v6, 5  ;;  %v821_v59 = vshll.u32 %v3998_v47, %v812_v36 }
  0xbe   :  { %v757_v46 = vshll.u32 %v2934_v17, 30  ;;  %v822_v26 = vshrl.u32 %v3996_v49, %v813_v28  ;;  %v571_v22 = vsel %vm488_vm3, %v570_v30, %v569_v31  ;;  %v806_v2 = vor.u32 8388608, %v805_v13 }
  0xbf   :  { %v4016_v14 = vmov 920167782   ;;  %vm269_vm5 = vcmp.lt.s32.totalorder %v2748_v24, 2  ;;  %vm373_vm6 = vcmp.lt.s32.totalorder %v2814_v21, 2  ;;  %v666_v16 = vsub.s32 4294967266, %v2932_v52 }
  0xc0   :  { %v825_v0 = vshrl.u32 %v4016_v14, %v813_v28  ;;  %v827_v39 = vshll.u32 %v4016_v14, %v812_v36  ;;  %v2952_v25 = vsub.s32 %v754_v18, %v757_v46  ;;  %v4017_v6 = vmov 1326507024  }
  0xc1   :  { %v828_v61 = vshrl.u32 %v4017_v6, %v813_v28  ;;  %v817_v41 = vor.u32 %v816_v5, %v815_v27  ;;  %v820_v49 = vor.u32 %v819_v42, %v818_v38  ;;  %v906_v30 = vshrl.u32 %v905_v53, 23 }
  0xc2   :  { %v826_v31 = vor.u32 %v825_v0, %v824_v1  ;;  %v4018_v13 = vand.u32 2147483647, %v2456_v34  ;;  %v760_v47 = vsub.s32 0, %v2952_v25  ;;  %v814_v45 = vshrl.u32 %v4003_v43, %v813_v28 }
  0xc3   :  { %v823_v18 = vor.u32 %v822_v26, %v821_v59  ;;  %vm830_vm9 = vcmp.lt.s32.totalorder %v811_v23, 1  ;;  %v662_v46 = vsub.s32 32, %v2932_v52  ;;  %v829_v40 = vor.u32 %v828_v61, %v827_v39 }
  0xc4   :  { %vm2958_vm7 = vcmp.le.f32.partialorder %v4018_v13, 0.7853982  ;;  %vm833_vm10 = vcmp.lt.s32.totalorder %v811_v23, 4  ;;  %v846_v27 = vshll.u32 %v806_v2, 8  ;;  %v667_v5 = vadd.s32 127, %v666_v16 }
  0xc5   :  { %v1990_v53 = vmin.u32 %v760_v47, %v2952_v25  ;;  %vm832_vm11 = vcmp.lt.s32.totalorder %v811_v23, 3  ;;  %v835_v38 = vsel %vm833_vm10, %v823_v18, 2102212464  ;;  %vm266_vm12 = vweird.f32 %v2440_v10 }
  0xc6   :  { %vm370_vm13 = vweird.f32 %v2442_v11  ;;  %vm831_vm14 = vcmp.lt.s32.totalorder %v811_v23, 2  ;;  %v838_v28 = vsel %vm830_vm9, %v817_v41, %v820_v49  ;;  %v839_v42 = vsel %vm833_vm10, %v826_v31, 920167782 }
  0xc7   :  { %v1997_v1 = vadd.s32 4294967169, %v906_v30  ;;  %v762_v59 = vclz %v1990_v53  ;;  %v834_v26 = vsel %vm830_vm9, %v814_v45, %v817_v41  ;;  %v836_v2 = vsel %vm832_vm11, %v820_v49, %v835_v38 }
  0xc8   :  { %v842_v47 = vsel %vm830_vm9, %v820_v49, %v823_v18  ;;  %v663_v0 = vshll.u32 %v2857_v9, %v2932_v52  ;;  %v664_v39 = vshrl.u32 %v646_v29, %v662_v46  ;;  %v840_v16 = vsel %vm832_vm11, %v823_v18, %v839_v42 }
  0xc9   :  { %v843_v61 = vsel %vm833_vm10, %v829_v40, 1326507024  ;;  %v668_v13 = vshll.u32 %v667_v5, 23  ;;  %v1991_v43 = vadd.s32 4294967294, %v762_v59  ;;  %v841_v56 = vsel %vm831_vm14, %v838_v28, %v840_v16 }
  0xca   :  { %v844_v30 = vsel %vm832_vm11, %v826_v31, %v843_v61  ;;  %v837_v45 = vsel %vm831_vm14, %v834_v26, %v836_v2  ;;  %v2982_v53 = vmul.u32.u64.low %v846_v27, %v841_v56  ;;  %v2983_v49 = vmul.u32.u64.high %v846_v27, %v841_v56, %v2982_v53 }
  0xcb   :  { %v845_v41 = vsel %vm831_vm14, %v842_v47, %v844_v30  ;;  %vm1992_vm15 = vcmp.lt.s32.totalorder %v1991_v43, 0  ;;  %v912_v52 = vadd.s32 1, %v1997_v1  ;;  %v276_v40 = vsel %vm269_vm5, %v2905_v15, %v2909_v3 }
  0xcc   :  { %v2986_v9 = vmul.u32.u64.low %v846_v27, %v845_v41  ;;  %v2987_v29 = vmul.u32.u64.high %v846_v27, %v845_v41, %v2986_v9  ;;  %v380_v23 = vsel %vm373_vm6, %v2917_v37, %v2913_v20  ;;  %v575_v56 = vsel %vm2958_vm7, 0, %v2922_v33 }
  0xcd   :  { %v765_v31 = vsel %vm1992_vm15, 0, %v1991_v43  ;;  %v470_v18 = vsel %vm2847_vm8, %v2444_v12, %v2926_v8  ;;  %v853_v5 = vmul.u32 %v846_v27, %v837_v45  ;;  %vm913_vm0 = vcmp.gt.s32.totalorder %v912_v52, 0 }
  0xce   :  { %v770_v46 = vsub.s32 4294967266, %v765_v31  ;;  %v574_v24 = vsel %vm2958_vm7, %v2456_v34, %v571_v22  ;;  %v856_v21 = vadd.s32 1, %v2983_v49  ;;  %v4021_v15 = vand.u32 2147483647, %v2722_v57 }
  0xcf   :  { %v914_v20 = vsel %vm913_vm0, %v912_v52, 0  ;;  %v665_v37 = vor.u32 %v664_v39, %v663_v0  ;;  %v669_v43 = vor.u32 4788187, %v668_v13  ;;  %v750_v33 = vadd.s32 %v2872_v51, %v2886_v7 }
  0xd0   :  { %v909_v3 = vand.u32 8388607, %v4021_v15  ;;  %vm855_vm8 = vc.u32 %v2987_v29, %v2982_v53  ;;  %v766_v50 = vsub.s32 32, %v765_v31  ;;  %v771_v8 = vadd.s32 127, %v770_v46 }
  0xd1   :  { %v857_v27 = vsel %vm855_vm8, %v856_v21, %v2983_v49  ;;  %v916_v36 = vand.u32 31, %v914_v20  ;;  %v3017_v22 = vsel %vm266_vm12, nan, %v276_v40  ;;  %v3021_v38 = vsel %vm370_vm13, nan, %v380_v23 }
  0xd2   :  { %2199 = vcosq.f32 %v470_v18  ;;  %v858_v28 = vadd.s32 %v857_v27, %v853_v5  ;;  %v579_v51 = vadd.s32 3, %v575_v56  ;;  %v676_v7 = vsub.s32 4, %v2839_v35 }
  0xd3   :  { %2201 = vsinq.f32 %v470_v18  ;;  %v917_v42 = vsub.s32 32, %v916_v36  ;;  %v670_v1 = vand.u32 2147483647, %v669_v43  ;;  %v672_v59 = vcvt.s32.f32 %v665_v37 }
  0xd4   :  { %2203 = vcosq.f32 %v574_v24  ;;  %v859_v26 = vadd.s32 536870912, %v858_v28  ;;  %v767_v2 = vshll.u32 %v2952_v25, %v765_v31  ;;  %v768_v10 = vshrl.u32 %v750_v33, %v766_v50 }
  0xd5   :  { %v772_v47 = vshll.u32 %v771_v8, 23  ;;  %v910_v0 = vor.u32 8388608, %v909_v3  ;;  %v4022_v11 = vmov 683565275   ;;  %v4023_v61 = vmov 2475754826  }
  0xd6   :  { %v3025_v39 = vshrl.u32 %v859_v26, 30  ;;  %v919_v16 = vshll.u32 %v4022_v11, %v916_v36  ;;  %v922_v13 = vshll.u32 %v4023_v61, %v916_v36  ;;  %v1009_v30 = vand.u32 2139095040, %v2725_v19 }
  0xd7   :  { %vm592_vm1 = vcmp.lt.s32.totalorder %v2642_v63, 0  ;;  %v920_v45 = vshrl.u32 %v4023_v61, %v917_v42  ;;  %v4024_v41 = vmov 2131351028   ;;  %v4025_v9 = vmov 2102212464  }
  0xd8   :  { %v923_v49 = vshrl.u32 %v4024_v41, %v917_v42  ;;  %v928_v52 = vshll.u32 %v4025_v9, %v916_v36  ;;  %v929_v25 = vshrl.u32 %v4016_v14, %v917_v42  ;;  %v861_v40 = vshll.u32 %v3025_v39, 30 }
  0xd9   :  { %v915_v23 = vshrl.u32 %v914_v20, 5  ;;  %v925_v56 = vshll.u32 %v4024_v41, %v916_v36  ;;  %v926_v31 = vshrl.u32 %v4025_v9, %v917_v42  ;;  %2205 = vsinq.f32 %v574_v24 }
  0xda   :  { %v769_v18 = vor.u32 %v768_v10, %v767_v2  ;;  %v773_v46 = vor.u32 4788187, %v772_v47  ;;  %v931_v5 = vshll.u32 %v4016_v14, %v916_v36  ;;  %v673_v21 = vmul.f32 %v672_v59, %v670_v1 }
  0xdb   :  { %v3039_v15 = vsub.s32 %v858_v28, %v861_v40  ;;  %v918_v3 = vshrl.u32 %v4022_v11, %v917_v42  ;;  %v3042_v37 = vshll.u32 %v910_v0, 8  ;;  %v921_v43 = vor.u32 %v920_v45, %v919_v16 }
  0xdc   :  { %v924_v33 = vor.u32 %v923_v49, %v922_v13  ;;  %v930_v50 = vor.u32 %v929_v25, %v928_v52  ;;  %v932_v20 = vshrl.u32 %v4017_v6, %v917_v42  ;;  %v927_v27 = vor.u32 %v926_v31, %v925_v56 }
  0xdd   :  { %v864_v8 = vsub.s32 0, %v3039_v15  ;;  %vm934_vm2 = vcmp.lt.s32.totalorder %v915_v23, 1  ;;  %v1010_v24 = vshrl.u32 %v1009_v30, 23  ;;  %vm481_vm3 = vcmp.eq.s32.totalorder %v2899_v62, 2 }
  0xde   :  { %v4026_v36 = vand.u32 2147483647, %v2642_v63  ;;  %v774_v1 = vand.u32 2147483647, %v773_v46  ;;  %v776_v59 = vcvt.s32.f32 %v769_v18  ;;  %v933_v26 = vor.u32 %v932_v20, %v931_v5 }
  0xdf   :  { %vm937_vm5 = vcmp.lt.s32.totalorder %v915_v23, 4  ;;  %vm696_vm6 = vcmp.lt.s32.totalorder %v2713_v44, 0  ;;  %v1994_v42 = vmin.u32 %v864_v8, %v3039_v15  ;;  %vm935_vm7 = vcmp.lt.s32.totalorder %v915_v23, 2  ;;  %v2200_v10 = vpop.eup %2199 }
  0xe0   :  { %vm3049_vm4 = vcmp.le.f32.partialorder %v4026_v36, 0.7853982  ;;  %vm936_vm9 = vcmp.lt.s32.totalorder %v915_v23, 3  ;;  %v939_v2 = vsel %vm937_vm5, %v927_v27, 2102212464  ;;  %vm478_vm10 = vcmp.eq.s32.totalorder %v2899_v62, 0  ;;  %v2202_v30 = vpop.eup %2201 }
  0xe1   :  { %v938_v47 = vsel %vm934_vm2, %v918_v3, %v921_v43  ;;  %v940_v0 = vsel %vm936_vm9, %v924_v33, %v939_v2  ;;  %v942_v16 = vsel %vm934_vm2, %v921_v43, %v924_v33  ;;  %v943_v13 = vsel %vm937_vm5, %v930_v50, 920167782  ;;  %v3066_v40 = vpop.eup %2203 }
  0xe2   :  { %v3061_v45 = vand.u32 3, %v579_v51  ;;  %v674_v49 = vxor.u32 2147483648, %v673_v21  ;;  %v677_v52 = vsel %vm592_vm1, %v676_v7, %v2839_v35  ;;  %v866_v25 = vclz %v1994_v42 }
  0xe3   :  { %v4029_v56 = vand.u32 2147483647, %v2713_v44  ;;  %v777_v18 = vmul.f32 %v776_v59, %v774_v1  ;;  %v944_v46 = vsel %vm936_vm9, %v927_v27, %v943_v13  ;;  %v946_v51 = vsel %vm934_vm2, %v924_v33, %v927_v27 }
  0xe4   :  { %v947_v5 = vsel %vm937_vm5, %v933_v26, 1326507024  ;;  %vm477_vm12 = vcmp.lt.s32.totalorder %v2899_v62, 2  ;;  %v1995_v3 = vadd.s32 4294967294, %v866_v25  ;;  %v941_v35 = vsel %vm935_vm7, %v938_v47, %v940_v0 }
  0xe5   :  { %vm3070_vm11 = vcmp.le.f32.partialorder %v4029_v56, 0.7853982  ;;  %v945_v7 = vsel %vm935_vm7, %v942_v16, %v944_v46  ;;  %v948_v43 = vsel %vm936_vm9, %v930_v50, %v947_v5  ;;  %v2001_v1 = vadd.s32 4294967169, %v1010_v24 }
  0xe6   :  { %v949_v20 = vsel %vm935_vm7, %v946_v51, %v948_v43  ;;  %v3083_v8 = vmul.u32.u64.low %v3042_v37, %v945_v7  ;;  %v3084_v36 = vmul.u32.u64.high %v3042_v37, %v945_v7, %v3083_v8  ;;  %v482_v33 = vxor.u32 2147483648, %v2200_v10  ;;  %v3092_v23 = vpop.eup %2205 }
  0xe7   :  { %vm585_vm13 = vcmp.eq.s32.totalorder %v3061_v45, 2  ;;  %vm1996_vm14 = vcmp.lt.s32.totalorder %v1995_v3, 0  ;;  %v3089_v27 = vmul.u32.u64.low %v3042_v37, %v949_v20  ;;  %v3090_v59 = vmul.u32.u64.high %v3042_v37, %v949_v20, %v3089_v27 }
  0xe8   :  { %v479_v26 = vxor.u32 2147483648, %v2202_v30  ;;  %v778_v42 = vxor.u32 2147483648, %v777_v18  ;;  %v869_v2 = vsel %vm1996_vm14, 0, %v1995_v3  ;;  %v1016_v50 = vadd.s32 1, %v2001_v1 }
  0xe9   :  { %v675_v47 = vsel %vm592_vm1, %v674_v49, %v673_v21  ;;  %v679_v24 = vsel %vm3049_vm4, 0, %v677_v52  ;;  %v874_v0 = vsub.s32 4294967266, %v869_v2  ;;  %v957_v16 = vmul.u32 %v3042_v37, %v941_v35 }
  0xea   :  { %v854_v13 = vadd.s32 %v2982_v53, %v2987_v29  ;;  %v870_v25 = vsub.s32 32, %v869_v2  ;;  %v960_v56 = vadd.s32 1, %v3084_v36  ;;  %vm1017_vm15 = vcmp.gt.s32.totalorder %v1016_v50, 0 }
  0xeb   :  { %v483_v46 = vsel %vm481_vm3, %v482_v33, %v2202_v30  ;;  %v780_v51 = vsub.s32 4, %v2934_v17  ;;  %v875_v5 = vadd.s32 127, %v874_v0  ;;  %vm959_vm0 = vc.u32 %v3090_v59, %v3083_v8 }
  0xec   :  { %v683_v21 = vadd.s32 3, %v679_v24  ;;  %v779_v37 = vsel %vm696_vm6, %v778_v42, %v777_v18  ;;  %v961_v49 = vsel %vm959_vm0, %v960_v56, %v3084_v36  ;;  %v1018_v53 = vsel %vm1017_vm15, %v1016_v50, 0 }
  0xed   :  { %v480_v29 = vsel %vm478_vm10, %v2200_v10, %v479_v26  ;;  %v678_v30 = vsel %vm3049_vm4, %v2642_v63, %v675_v47  ;;  %v962_v52 = vadd.s32 %v961_v49, %v957_v16  ;;  %v4005_v3 = vand.u32 2147483647, %v2725_v19 }
  0xee   :  { %v586_v35 = vxor.u32 2147483648, %v3066_v40  ;;  %v871_v7 = vshll.u32 %v3039_v15, %v869_v2  ;;  %v872_v43 = vshrl.u32 %v854_v13, %v870_v25  ;;  %v1020_v20 = vand.u32 31, %v1018_v53 }
  0xef   :  { %v3121_v18 = vsel %vm696_vm6, %v780_v51, %v2934_v17  ;;  %v782_v10 = vsel %vm3070_vm11, %v2713_v44, %v779_v37  ;;  %v876_v28 = vshll.u32 %v875_v5, 23  ;;  %v963_v36 = vadd.s32 536870912, %v962_v52 }
  0xf0   :  { %v3128_v1 = vsel %vm477_vm12, %v480_v29, %v483_v46  ;;  %2207 = vcosq.f32 %v678_v30  ;;  %v3130_v33 = vand.u32 3, %v683_v21  ;;  %v1021_v15 = vsub.s32 32, %v1020_v20 }
  0xf1   :  { %2209 = vsinq.f32 %v678_v30  ;;  %v3133_v26 = vshrl.u32 %v963_v36, 30  ;;  %v1013_v17 = vand.u32 8388607, %v4005_v3  ;;  %v3140_v42 = vsel %vm585_vm13, %v586_v35, %v3092_v23 }
  0xf2   :  { %2211 = vcosq.f32 %v782_v10  ;;  %v873_v2 = vor.u32 %v872_v43, %v871_v7  ;;  %v877_v50 = vor.u32 4788187, %v876_v28  ;;  %v1023_v24 = vshll.u32 %v4022_v11, %v1020_v20 }
  0xf3   :  { %v965_v47 = vshll.u32 %v3133_v26, 30  ;;  %v1026_v0 = vshll.u32 %v4023_v61, %v1020_v20  ;;  %v1024_v16 = vshrl.u32 %v4023_v61, %v1021_v15  ;;  %v1027_v13 = vshrl.u32 %v4024_v41, %v1021_v15 }
  0xf4   :  { %v1029_v25 = vshll.u32 %v4024_v41, %v1020_v20  ;;  %v1030_v56 = vshrl.u32 %v4025_v9, %v1021_v15  ;;  %v1014_v51 = vor.u32 8388608, %v1013_v17  ;;  %v1019_v5 = vshrl.u32 %v1018_v53, 5 }
  0xf5   :  { %v3152_v46 = vsub.s32 %v962_v52, %v965_v47  ;;  %v1032_v21 = vshll.u32 %v4025_v9, %v1020_v20  ;;  %v880_v37 = vcvt.s32.f32 %v873_v2  ;;  %v1033_v49 = vshrl.u32 %v4016_v14, %v1021_v15 }
  0xf6   :  { %v1035_v29 = vshll.u32 %v4016_v14, %v1020_v20  ;;  %v1113_v30 = vand.u32 2139095040, %v2728_v48  ;;  %vm582_vm8 = vcmp.eq.s32.totalorder %v3061_v45, 0  ;;  %v878_v35 = vand.u32 2147483647, %v877_v50 }
  0xf7   :  { %v968_v7 = vsub.s32 0, %v3152_v46  ;;  %v1022_v43 = vshrl.u32 %v4022_v11, %v1021_v15  ;;  %v1036_v52 = vshrl.u32 %v4017_v6, %v1021_v15  ;;  %v1025_v28 = vor.u32 %v1024_v16, %v1023_v24 }
  0xf8   :  { %v1028_v53 = vor.u32 %v1027_v13, %v1026_v0  ;;  %v1031_v36 = vor.u32 %v1030_v56, %v1029_v25  ;;  %v1034_v17 = vor.u32 %v1033_v49, %v1032_v21  ;;  %2213 = vsinq.f32 %v782_v10 }
  0xf9   :  { %v1998_v2 = vmin.u32 %v968_v7, %v3152_v46  ;;  %v1037_v47 = vor.u32 %v1036_v52, %v1035_v29  ;;  %vm1038_vm1 = vcmp.lt.s32.totalorder %v1019_v5, 1  ;;  %vm1040_vm2 = vcmp.lt.s32.totalorder %v1019_v5, 3 }
  0xfa   :  { %vm1041_vm3 = vcmp.lt.s32.totalorder %v1019_v5, 4  ;;  %v1054_v20 = vshll.u32 %v1014_v51, 8  ;;  %v1114_v3 = vshrl.u32 %v1113_v30, 23  ;;  %v881_v50 = vmul.f32 %v880_v37, %v878_v35 }
  0xfb   :  { %v970_v62 = vclz %v1998_v2  ;;  %vm1039_vm4 = vcmp.lt.s32.totalorder %v1019_v5, 2  ;;  %v1042_v27 = vsel %vm1038_vm1, %v1022_v43, %v1025_v28  ;;  %vm474_vm5 = vweird.f32 %v2444_v12 }
  0xfc   :  { %vm581_vm6 = vcmp.lt.s32.totalorder %v3061_v45, 2  ;;  %vm800_vm7 = vcmp.lt.s32.totalorder %v2716_v58, 0  ;;  %v1043_v10 = vsel %vm1041_vm3, %v1031_v36, 2102212464  ;;  %v1046_v15 = vsel %vm1038_vm1, %v1025_v28, %v1028_v53 }
  0xfd   :  { %v1047_v24 = vsel %vm1041_vm3, %v1034_v17, 920167782  ;;  %v1050_v0 = vsel %vm1038_vm1, %v1028_v53, %v1031_v36  ;;  %v2208_v16 = vpop.eup %2207  ;;  %vm686_vm9 = vcmp.eq.s32.totalorder %v3130_v33, 0  ;;  %vm689_vm10 = vcmp.eq.s32.totalorder %v3130_v33, 2 }
  0xfe   :  { %v1999_v13 = vadd.s32 4294967294, %v970_v62  ;;  %v1044_v25 = vsel %vm1040_vm2, %v1028_v53, %v1043_v10  ;;  %v1048_v56 = vsel %vm1040_vm2, %v1031_v36, %v1047_v24  ;;  %v1051_v51 = vsel %vm1041_vm3, %v1037_v47, 1326507024  ;;  %v2210_v21 = vpop.eup %2209 }
  0xff   :  { %v1045_v37 = vsel %vm1039_vm4, %v1042_v27, %v1044_v25  ;;  %v1049_v49 = vsel %vm1039_vm4, %v1046_v15, %v1048_v56  ;;  %v1052_v29 = vsel %vm1040_vm2, %v1034_v17, %v1051_v51  ;;  %v2005_v30 = vadd.s32 4294967169, %v1114_v3  ;;  %v3176_v35 = vpop.eup %2211 }
 0x100   :  { %vm2000_vm12 = vcmp.lt.s32.totalorder %v1999_v13, 0  ;;  %v1053_v7 = vsel %vm1039_vm4, %v1050_v0, %v1052_v29  ;;  %v3179_v62 = vmul.u32.u64.low %v1054_v20, %v1049_v49  ;;  %v3180_v43 = vmul.u32.u64.high %v1054_v20, %v1049_v49, %v3179_v62 }
 0x101   :  { %v973_v52 = vsel %vm2000_vm12, 0, %v1999_v13  ;;  %v3183_v28 = vmul.u32.u64.low %v1054_v20, %v1053_v7  ;;  %v3184_v53 = vmul.u32.u64.high %v1054_v20, %v1053_v7, %v3183_v28  ;;  %v4006_v27 = vand.u32 2147483647, %v2728_v48 }
 0x102   :  { %v958_v36 = vadd.s32 %v3083_v8, %v3090_v59  ;;  %v974_v17 = vsub.s32 32, %v973_v52  ;;  %v978_v3 = vsub.s32 4294967266, %v973_v52  ;;  %v1120_v2 = vadd.s32 1, %v2005_v30 }
 0x103   :  { %v4032_v47 = vxor.u32 2147483648, %v3092_v23  ;;  %v690_v10 = vxor.u32 2147483648, %v2208_v16  ;;  %v4033_v15 = vsel %vm3070_vm11, 0, %v3121_v18  ;;  %v1061_v0 = vmul.u32 %v1054_v20, %v1045_v37 }
 0x104   :  { %v787_v24 = vadd.s32 3, %v4033_v15  ;;  %v882_v13 = vxor.u32 2147483648, %v881_v50  ;;  %v979_v25 = vadd.s32 127, %v978_v3  ;;  %v1064_v8 = vadd.s32 1, %v3180_v43 }
 0x105   :  { %v584_v5 = vsel %vm582_vm8, %v3066_v40, %v4032_v47  ;;  %vm1121_vm13 = vcmp.gt.s32.totalorder %v1120_v2, 0  ;;  %v687_v59 = vxor.u32 2147483648, %v2210_v21  ;;  %v884_v56 = vsub.s32 4, %v3025_v39  ;;  %v3206_v20 = vpop.eup %2213 }
 0x106   :  { %vm1063_vm14 = vc.u32 %v3184_v53, %v3179_v62  ;;  %v1122_v23 = vsel %vm1121_vm13, %v1120_v2, 0  ;;  %v975_v40 = vshll.u32 %v3152_v46, %v973_v52  ;;  %v976_v51 = vshrl.u32 %v958_v36, %v974_v17 }
 0x107   :  { %v1065_v31 = vsel %vm1063_vm14, %v1064_v8, %v3180_v43  ;;  %v1117_v18 = vand.u32 8388607, %v4006_v27  ;;  %v4034_v37 = vand.u32 2147483647, %v2716_v58  ;;  %v980_v29 = vshll.u32 %v979_v25, 23 }
 0x108   :  { %v1066_v30 = vadd.s32 %v1065_v31, %v1061_v0  ;;  %v1124_v7 = vand.u32 31, %v1122_v23  ;;  %v3217_v46 = vsel %vm474_vm5, nan, %v3128_v1  ;;  %v3222_v43 = vsel %vm581_vm6, %v584_v5, %v3140_v42 }
 0x109   :  { %vm3210_vm11 = vcmp.le.f32.partialorder %v4034_v37, 0.7853982  ;;  %v3224_v52 = vand.u32 3, %v787_v24  ;;  %v883_v28 = vsel %vm800_vm7, %v882_v13, %v881_v50  ;;  %v3230_v36 = vsel %vm686_vm9, %v2208_v16, %v687_v59 }
 0x10a   :  { %v3234_v17 = vsel %vm689_vm10, %v690_v10, %v2210_v21  ;;  %v1067_v12 = vadd.s32 536870912, %v1066_v30  ;;  %v1125_v1 = vsub.s32 32, %v1124_v7  ;;  %v3240_v45 = vsel %vm800_vm7, %v884_v56, %v3025_v39 }
 0x10b   :  { %v977_v42 = vor.u32 %v976_v51, %v975_v40  ;;  %v1118_v2 = vor.u32 8388608, %v1117_v18  ;;  %v886_v50 = vsel %vm3210_vm11, %v2716_v58, %v883_v28  ;;  %v981_v16 = vor.u32 4788187, %v980_v29 }
 0x10c   :  { %v3245_v47 = vshrl.u32 %v1067_v12, 30  ;;  %v1123_v21 = vshrl.u32 %v1122_v23, 5  ;;  %v1127_v5 = vshll.u32 %v4022_v11, %v1124_v7  ;;  %v1128_v10 = vshrl.u32 %v4023_v61, %v1125_v1 }
 0x10d   :  { %v1130_v15 = vshll.u32 %v4023_v61, %v1124_v7  ;;  %v1131_v24 = vshrl.u32 %v4024_v41, %v1125_v1  ;;  %v791_v39 = vxor.u32 2147483648, %v3206_v20  ;;  %v1133_v13 = vshll.u32 %v4024_v41, %v1124_v7 }
 0x10e   :  { %v1069_v0 = vshll.u32 %v3245_v47, 30  ;;  %v1134_v25 = vshrl.u32 %v4025_v9, %v1125_v1  ;;  %2215 = vcosq.f32 %v886_v50  ;;  %v984_v8 = vcvt.s32.f32 %v977_v42 }
 0x10f   :  { %v1136_v59 = vshll.u32 %v4025_v9, %v1124_v7  ;;  %v1217_v56 = vand.u32 2139095040, %v2731_v4  ;;  %vm790_vm15 = vcmp.eq.s32.totalorder %v3224_v52, 0  ;;  %vm793_vm0 = vcmp.eq.s32.totalorder %v3224_v52, 2 }
 0x110   :  { %v982_v23 = vand.u32 2147483647, %v981_v16  ;;  %v3259_v40 = vsub.s32 %v1066_v30, %v1069_v0  ;;  %v1137_v51 = vshrl.u32 %v4016_v14, %v1125_v1  ;;  %v1139_v31 = vshll.u32 %v4016_v14, %v1124_v7 }
 0x111   :  { %v1129_v18 = vor.u32 %v1128_v10, %v1127_v5  ;;  %v1132_v37 = vor.u32 %v1131_v24, %v1130_v15  ;;  %v1140_v29 = vshrl.u32 %v4017_v6, %v1125_v1  ;;  %vm1142_vm8 = vcmp.lt.s32.totalorder %v1123_v21, 1 }
 0x112   :  { %vm904_vm1 = vcmp.lt.s32.totalorder %v2722_v57, 0  ;;  %v1072_v28 = vsub.s32 0, %v3259_v40  ;;  %v1126_v12 = vshrl.u32 %v4022_v11, %v1125_v1  ;;  %v1135_v42 = vor.u32 %v1134_v25, %v1133_v13 }
 0x113   :  { %v1138_v27 = vor.u32 %v1137_v51, %v1136_v59  ;;  %vm685_vm2 = vcmp.lt.s32.totalorder %v3130_v33, 2  ;;  %2217 = vsinq.f32 %v886_v50  ;;  %v1141_v30 = vor.u32 %v1140_v29, %v1139_v31 }
 0x114   :  { %vm1145_vm3 = vcmp.lt.s32.totalorder %v1123_v21, 4  ;;  %v1218_v16 = vshrl.u32 %v1217_v56, 23  ;;  %vm789_vm4 = vcmp.lt.s32.totalorder %v3224_v52, 2  ;;  %v985_v7 = vmul.f32 %v984_v8, %v982_v23 }
 0x115   :  { %v2002_v5 = vmin.u32 %v1072_v28, %v3259_v40  ;;  %vm1144_vm5 = vcmp.lt.s32.totalorder %v1123_v21, 3  ;;  %v1158_v10 = vshll.u32 %v1118_v2, 8  ;;  %vm578_vm6 = vweird.f32 %v2456_v34 }
 0x116   :  { %v4037_v15 = vand.u32 2147483647, %v2722_v57  ;;  %vm1143_vm9 = vcmp.lt.s32.totalorder %v1123_v21, 2  ;;  %v1147_v50 = vsel %vm1145_vm3, %v1135_v42, 2102212464  ;;  %v1150_v24 = vsel %vm1142_vm8, %v1129_v18, %v1132_v37 }
 0x117   :  { %v1151_v0 = vsel %vm1145_vm3, %v1138_v27, 920167782  ;;  %v988_v13 = vsub.s32 4, %v3133_v26  ;;  %v1074_v25 = vclz %v2002_v5  ;;  %v1146_v2 = vsel %vm1142_vm8, %v1126_v12, %v1129_v18 }
 0x118   :  { %vm3273_vm7 = vcmp.le.f32.partialorder %v4037_v15, 0.7853982  ;;  %v1154_v8 = vsel %vm1142_vm8, %v1132_v37, %v1135_v42  ;;  %vm682_vm10 = vweird.f32 %v2642_v63  ;;  %vm786_vm12 = vweird.f32 %v2713_v44 }
 0x119   :  { %v1148_v59 = vsel %vm1144_vm5, %v1132_v37, %v1147_v50  ;;  %v1152_v56 = vsel %vm1144_vm5, %v1135_v42, %v1151_v0  ;;  %v1155_v23 = vsel %vm1145_vm3, %v1141_v30, 1326507024  ;;  %v2009_v51 = vadd.s32 4294967169, %v1218_v16 }
 0x11a   :  { %v986_v31 = vxor.u32 2147483648, %v985_v7  ;;  %v2003_v29 = vadd.s32 4294967294, %v1074_v25  ;;  %v1153_v28 = vsel %vm1143_vm9, %v1150_v24, %v1152_v56  ;;  %v1156_v5 = vsel %vm1144_vm5, %v1138_v27, %v1155_v23 }
 0x11b   :  { %v1149_v18 = vsel %vm1143_vm9, %v1146_v2, %v1148_v59  ;;  %v1157_v12 = vsel %vm1143_vm9, %v1154_v8, %v1156_v5  ;;  %v3292_v15 = vmul.u32.u64.low %v1158_v10, %v1153_v28  ;;  %v3293_v3 = vmul.u32.u64.high %v1158_v10, %v1153_v28, %v3292_v15  ;;  %v3310_v0 = vpop.eup %2215 }
 0x11c   :  { %v887_v37 = vsel %vm3210_vm11, 0, %v3240_v45  ;;  %vm2004_vm13 = vcmp.lt.s32.totalorder %v2003_v29, 0  ;;  %v3299_v42 = vmul.u32.u64.low %v1158_v10, %v1157_v12  ;;  %v3300_v30 = vmul.u32.u64.high %v1158_v10, %v1157_v12, %v3299_v42 }
 0x11d   :  { %v792_v27 = vsel %vm790_vm15, %v3176_v35, %v791_v39  ;;  %v4040_v21 = vxor.u32 2147483648, %v3176_v35  ;;  %v1077_v50 = vsel %vm2004_vm13, 0, %v2003_v29  ;;  %v1224_v24 = vadd.s32 1, %v2009_v51 }
 0x11e   :  { %v989_v49 = vsel %vm904_vm1, %v988_v13, %v3133_v26  ;;  %v1062_v45 = vadd.s32 %v3179_v62, %v3184_v53  ;;  %v1082_v25 = vsub.s32 4294967266, %v1077_v50  ;;  %v1165_v2 = vmul.u32 %v1158_v10, %v1149_v18 }
 0x11f   :  { %v795_v16 = vsel %vm793_vm0, %v4040_v21, %v3206_v20  ;;  %v987_v39 = vsel %vm904_vm1, %v986_v31, %v985_v7  ;;  %v1078_v35 = vsub.s32 32, %v1077_v50  ;;  %v1168_v8 = vadd.s32 1, %v3293_v3 }
 0x120   :  { %vm1225_vm14 = vcmp.gt.s32.totalorder %v1224_v24, 0  ;;  %v692_v20 = vsel %vm685_vm2, %v3230_v36, %v3234_v17  ;;  %v891_v59 = vadd.s32 3, %v887_v37  ;;  %v1083_v56 = vadd.s32 127, %v1082_v25  ;;  %v3330_v10 = vpop.eup %2217 }
 0x121   :  { %vm1167_vm11 = vc.u32 %v3300_v30, %v3292_v15  ;;  %v796_v26 = vsel %vm789_vm4, %v792_v27, %v795_v16  ;;  %v1214_v53 = vand.u32 2147483647, %v2731_v4  ;;  %v1226_v7 = vsel %vm1225_vm14, %v1224_v24, 0 }
 0x122   :  { %v1169_v62 = vsel %vm1167_vm11, %v1168_v8, %v3293_v3  ;;  %v3335_v33 = vsel %vm578_vm6, nan, %v3222_v43  ;;  %v990_v36 = vsel %vm3273_vm7, %v2722_v57, %v987_v39  ;;  %v991_v52 = vsel %vm3273_vm7, 0, %v989_v49 }
 0x123   :  { %v1170_v17 = vadd.s32 %v1169_v62, %v1165_v2  ;;  %v1079_v3 = vshll.u32 %v3259_v40, %v1077_v50  ;;  %v1080_v13 = vshrl.u32 %v1062_v45, %v1078_v35  ;;  %v1084_v23 = vshll.u32 %v1083_v56, 23 }
 0x124   :  { %v1228_v51 = vand.u32 31, %v1226_v7  ;;  %v3345_v31 = vsel %vm682_vm10, nan, %v692_v20  ;;  %v3349_v34 = vsel %vm786_vm12, nan, %v796_v26  ;;  %v3351_v43 = vand.u32 3, %v891_v59 }
 0x125   :  { %v1171_v29 = vadd.s32 536870912, %v1170_v17  ;;  %v898_v1 = vxor.u32 2147483648, %v3310_v0  ;;  %v3354_v28 = vadd.s32 3, %v991_v52  ;;  %vm1008_vm15 = vcmp.lt.s32.totalorder %v2725_v19, 0 }
 0x126   :  { %v1221_v40 = vand.u32 8388607, %v1214_v53  ;;  %v1229_v5 = vsub.s32 32, %v1228_v51  ;;  %v895_v63 = vxor.u32 2147483648, %v3330_v10  ;;  %2219 = vcosq.f32 %v990_v36 }
 0x127   :  { %v1092_v44 = vsub.s32 4, %v3245_v47  ;;  %v3361_v18 = vshrl.u32 %v1171_v29, 30  ;;  %2221 = vsinq.f32 %v990_v36  ;;  %v1081_v12 = vor.u32 %v1080_v13, %v1079_v3 }
 0x128   :  { %v1085_v37 = vor.u32 4788187, %v1084_v23  ;;  %v1231_v42 = vshll.u32 %v4022_v11, %v1228_v51  ;;  %v1232_v21 = vshrl.u32 %v4023_v61, %v1229_v5  ;;  %v1234_v16 = vshll.u32 %v4023_v61, %v1228_v51 }
 0x129   :  { %v1173_v27 = vshll.u32 %v3361_v18, 30  ;;  %v1235_v50 = vshrl.u32 %v4024_v41, %v1229_v5  ;;  %v1227_v24 = vshrl.u32 %v1226_v7, 5  ;;  %v1237_v49 = vshll.u32 %v4024_v41, %v1228_v51 }
 0x12a   :  { %v1238_v45 = vshrl.u32 %v4025_v9, %v1229_v5  ;;  %v1240_v25 = vshll.u32 %v4025_v9, %v1228_v51  ;;  %v1222_v39 = vor.u32 8388608, %v1221_v40  ;;  %v1241_v35 = vshrl.u32 %v4016_v14, %v1229_v5 }
 0x12b   :  { %v3371_v2 = vsub.s32 %v1170_v17, %v1173_v27  ;;  %v1321_v8 = vand.u32 2139095040, %v2738_v32  ;;  %v1086_v20 = vand.u32 2147483647, %v1085_v37  ;;  %v1088_v59 = vcvt.s32.f32 %v1081_v12 }
 0x12c   :  { %v1243_v56 = vshll.u32 %v4016_v14, %v1228_v51  ;;  %v1244_v26 = vshrl.u32 %v4017_v6, %v1229_v5  ;;  %v1230_v7 = vshrl.u32 %v4022_v11, %v1229_v5  ;;  %v1233_v36 = vor.u32 %v1232_v21, %v1231_v42 }
 0x12d   :  { %v1176_v62 = vsub.s32 0, %v3371_v2  ;;  %v1236_v52 = vor.u32 %v1235_v50, %v1234_v16  ;;  %v4041_v17 = vand.u32 2147483647, %v2725_v19  ;;  %v1239_v13 = vor.u32 %v1238_v45, %v1237_v49 }
 0x12e   :  { %v1242_v23 = vor.u32 %v1241_v35, %v1240_v25  ;;  %v1245_v29 = vor.u32 %v1244_v26, %v1243_v56  ;;  %vm1246_vm8 = vcmp.lt.s32.totalorder %v1227_v24, 1  ;;  %vm897_vm1 = vcmp.eq.s32.totalorder %v3351_v43, 2 }
 0x12f   :  { %vm3381_vm0 = vcmp.le.f32.partialorder %v4041_v17, 0.7853982  ;;  %v1093_v51 = vsel %vm1008_vm15, %v1092_v44, %v3245_v47  ;;  %v1166_v40 = vadd.s32 %v3292_v15, %v3300_v30  ;;  %v2006_v5 = vmin.u32 %v1176_v62, %v3371_v2 }
 0x130   :  { %v1262_v12 = vshll.u32 %v1222_v39, 8  ;;  %vm894_vm2 = vcmp.eq.s32.totalorder %v3351_v43, 0  ;;  %v1089_v37 = vmul.f32 %v1088_v59, %v1086_v20  ;;  %vm1248_vm3 = vcmp.lt.s32.totalorder %v1227_v24, 3 }
 0x131   :  { %vm1249_vm4 = vcmp.lt.s32.totalorder %v1227_v24, 4  ;;  %v1322_v42 = vshrl.u32 %v1321_v8, 23  ;;  %v1178_v27 = vclz %v2006_v5  ;;  %vm1247_vm5 = vcmp.lt.s32.totalorder %v1227_v24, 2 }
 0x132   :  { %v1250_v21 = vsel %vm1246_vm8, %v1230_v7, %v1233_v36  ;;  %v1254_v16 = vsel %vm1246_vm8, %v1233_v36, %v1236_v52  ;;  %v1251_v50 = vsel %vm1249_vm4, %v1239_v13, 2102212464  ;;  %v1255_v47 = vsel %vm1249_vm4, %v1242_v23, 920167782 }
 0x133   :  { %v1258_v44 = vsel %vm1246_vm8, %v1236_v52, %v1239_v13  ;;  %v1259_v15 = vsel %vm1249_vm4, %v1245_v29, 1326507024  ;;  %vm893_vm6 = vcmp.lt.s32.totalorder %v3351_v43, 2  ;;  %v2007_v30 = vadd.s32 4294967294, %v1178_v27  ;;  %v3397_v39 = vpop.eup %2219 }
 0x134   :  { %v1252_v49 = vsel %vm1248_vm3, %v1236_v52, %v1251_v50  ;;  %v1256_v45 = vsel %vm1248_vm3, %v1239_v13, %v1255_v47  ;;  %v1260_v25 = vsel %vm1248_vm3, %v1242_v23, %v1259_v15  ;;  %v1090_v35 = vxor.u32 2147483648, %v1089_v37  ;;  %v2222_v56 = vpop.eup %2221 }
 0x135   :  { %v1257_v8 = vsel %vm1247_vm5, %v1254_v16, %v1256_v45  ;;  %v1261_v20 = vsel %vm1247_vm5, %v1258_v44, %v1260_v25  ;;  %v2013_v59 = vadd.s32 4294967169, %v1322_v42  ;;  %vm2008_vm7 = vcmp.lt.s32.totalorder %v2007_v30, 0 }
 0x136   :  { %v1253_v26 = vsel %vm1247_vm5, %v1250_v21, %v1252_v49  ;;  %v3402_v62 = vmul.u32.u64.low %v1262_v12, %v1261_v20  ;;  %v3403_v7 = vmul.u32.u64.high %v1262_v12, %v1261_v20, %v3402_v62  ;;  %v1181_v36 = vsel %vm2008_vm7, 0, %v2007_v30 }
 0x137   :  { %v3405_v17 = vmul.u32.u64.low %v1262_v12, %v1257_v8  ;;  %v3406_v52 = vmul.u32.u64.high %v1262_v12, %v1257_v8, %v3405_v17  ;;  %v1328_v13 = vadd.s32 1, %v2013_v59  ;;  %v1095_v23 = vsel %vm3381_vm0, 0, %v1093_v51 }
 0x138   :  { %v1182_v29 = vsub.s32 32, %v1181_v36  ;;  %v1183_v5 = vshll.u32 %v3371_v2, %v1181_v36  ;;  %v1186_v42 = vsub.s32 4294967266, %v1181_v36  ;;  %v3413_v27 = vand.u32 3, %v3354_v28 }
 0x139   :  { %v1091_v24 = vsel %vm1008_vm15, %v1090_v35, %v1089_v37  ;;  %v1318_v21 = vand.u32 2147483647, %v2738_v32  ;;  %vm1329_vm9 = vcmp.gt.s32.totalorder %v1328_v13, 0  ;;  %v1269_v47 = vmul.u32 %v1262_v12, %v1253_v26 }
 0x13a   :  { %v1184_v16 = vshrl.u32 %v1166_v40, %v1182_v29  ;;  %v1187_v50 = vadd.s32 127, %v1186_v42  ;;  %vm1271_vm10 = vc.u32 %v3403_v7, %v3405_v17  ;;  %v899_v2 = vsel %vm897_vm1, %v898_v1, %v3330_v10 }
 0x13b   :  { %v1099_v28 = vadd.s32 3, %v1095_v23  ;;  %v1272_v51 = vadd.s32 1, %v3406_v52  ;;  %v1330_v44 = vsel %vm1329_vm9, %v1328_v13, 0  ;;  %v896_v40 = vsel %vm894_vm2, %v3310_v0, %v895_v63 }
 0x13c   :  { %v1185_v12 = vor.u32 %v1184_v16, %v1183_v5  ;;  %v1188_v37 = vshll.u32 %v1187_v50, 23  ;;  %v1332_v15 = vand.u32 31, %v1330_v44  ;;  %v1002_v30 = vxor.u32 2147483648, %v3397_v39 }
 0x13d   :  { %v1094_v49 = vsel %vm3381_vm0, %v2725_v19, %v1091_v24  ;;  %v1273_v1 = vsel %vm1271_vm10, %v1272_v51, %v3406_v52  ;;  %v1325_v45 = vand.u32 8388607, %v1318_v21  ;;  %vm998_vm12 = vcmp.eq.s32.totalorder %v3413_v27, 0 }
 0x13e   :  { %vm1001_vm13 = vcmp.eq.s32.totalorder %v3413_v27, 2  ;;  %v1189_v10 = vor.u32 4788187, %v1188_v37  ;;  %v1274_v0 = vadd.s32 %v1273_v1, %v1269_v47  ;;  %v3442_v63 = vsel %vm893_vm6, %v896_v40, %v899_v2 }
 0x13f   :  { %v999_v25 = vxor.u32 2147483648, %v2222_v56  ;;  %v3444_v35 = vand.u32 3, %v1099_v28  ;;  %v1333_v3 = vsub.s32 32, %v1332_v15  ;;  %2223 = vcosq.f32 %v1094_v49 }
 0x140   :  { %v1190_v8 = vand.u32 2147483647, %v1189_v10  ;;  %v1192_v20 = vcvt.s32.f32 %v1185_v12  ;;  %v1275_v59 = vadd.s32 536870912, %v1274_v0  ;;  %vm997_vm14 = vcmp.lt.s32.totalorder %v3413_v27, 2 }
 0x141   :  { %v1003_v26 = vsel %vm1001_vm13, %v1002_v30, %v2222_v56  ;;  %2225 = vsinq.f32 %v1094_v49  ;;  %vm1112_vm11 = vcmp.lt.s32.totalorder %v2728_v48, 0  ;;  %v1326_v62 = vor.u32 8388608, %v1325_v45 }
 0x142   :  { %v1335_v36 = vshll.u32 %v4022_v11, %v1332_v15  ;;  %v3449_v43 = vshrl.u32 %v1275_v59, 30  ;;  %v1336_v52 = vshrl.u32 %v4023_v61, %v1333_v3  ;;  %v1338_v13 = vshll.u32 %v4023_v61, %v1332_v15 }
 0x143   :  { %v1339_v23 = vshrl.u32 %v4024_v41, %v1333_v3  ;;  %v1331_v29 = vshrl.u32 %v1330_v44, 5  ;;  %v1341_v5 = vshll.u32 %v4024_v41, %v1332_v15  ;;  %v1342_v42 = vshrl.u32 %v4025_v9, %v1333_v3 }
 0x144   :  { %v1344_v56 = vshll.u32 %v4025_v9, %v1332_v15  ;;  %v1000_v24 = vsel %vm998_vm12, %v3397_v39, %v999_v25  ;;  %v1193_v16 = vmul.f32 %v1192_v20, %v1190_v8  ;;  %v1277_v50 = vshll.u32 %v3449_v43, 30 }
 0x145   :  { %v1425_v47 = vand.u32 2139095040, %v2741_v60  ;;  %v4044_v2 = vand.u32 2147483647, %v2728_v48  ;;  %v1334_v51 = vshrl.u32 %v4022_v11, %v1333_v3  ;;  %v1345_v44 = vshrl.u32 %v4016_v14, %v1333_v3 }
 0x146   :  { %v1347_v40 = vshll.u32 %v4016_v14, %v1332_v15  ;;  %v1348_v12 = vshrl.u32 %v4017_v6, %v1333_v3  ;;  %v1196_v39 = vsub.s32 4, %v3361_v18  ;;  %v3473_v37 = vsub.s32 %v1274_v0, %v1277_v50 }
 0x147   :  { %vm3464_vm15 = vcmp.le.f32.partialorder %v4044_v2, 0.7853982  ;;  %v1337_v30 = vor.u32 %v1336_v52, %v1335_v36  ;;  %v1340_v49 = vor.u32 %v1339_v23, %v1338_v13  ;;  %v1343_v1 = vor.u32 %v1342_v42, %v1341_v5 }
 0x148   :  { %v1346_v45 = vor.u32 %v1345_v44, %v1344_v56  ;;  %v1349_v10 = vor.u32 %v1348_v12, %v1347_v40  ;;  %vm1350_vm0 = vcmp.lt.s32.totalorder %v1331_v29, 1  ;;  %v1194_v25 = vxor.u32 2147483648, %v1193_v16 }
 0x149   :  { %v1280_v8 = vsub.s32 0, %v3473_v37  ;;  %vm1352_vm8 = vcmp.lt.s32.totalorder %v1331_v29, 3  ;;  %v1366_v20 = vshll.u32 %v1326_v62, 8  ;;  %vm1351_vm1 = vcmp.lt.s32.totalorder %v1331_v29, 2 }
 0x14a   :  { %vm1353_vm2 = vcmp.lt.s32.totalorder %v1331_v29, 4  ;;  %v1354_v15 = vsel %vm1350_vm0, %v1334_v51, %v1337_v30  ;;  %v1426_v3 = vshrl.u32 %v1425_v47, 23  ;;  %v1358_v36 = vsel %vm1350_vm0, %v1337_v30, %v1340_v49 }
 0x14b   :  { %v2010_v59 = vmin.u32 %v1280_v8, %v3473_v37  ;;  %v1355_v0 = vsel %vm1353_vm2, %v1343_v1, 2102212464  ;;  %v1359_v52 = vsel %vm1353_vm2, %v1346_v45, 920167782  ;;  %vm1102_vm3 = vcmp.eq.s32.totalorder %v3444_v35, 0 }
 0x14c   :  { %vm1105_vm4 = vcmp.eq.s32.totalorder %v3444_v35, 2  ;;  %v1356_v13 = vsel %vm1352_vm8, %v1340_v49, %v1355_v0  ;;  %v1360_v23 = vsel %vm1352_vm8, %v1343_v1, %v1359_v52  ;;  %v1362_v62 = vsel %vm1350_vm0, %v1340_v49, %v1343_v1  ;;  %v2224_v2 = vpop.eup %2223 }
 0x14d   :  { %v1363_v5 = vsel %vm1353_vm2, %v1349_v10, 1326507024  ;;  %v1004_v42 = vsel %vm997_vm14, %v1000_v24, %v1003_v26  ;;  %v1195_v56 = vsel %vm1112_vm11, %v1194_v25, %v1193_v16  ;;  %v1197_v50 = vsel %vm1112_vm11, %v1196_v39, %v3361_v18 }
 0x14e   :  { %v1282_v47 = vclz %v2010_v59  ;;  %vm890_vm5 = vweird.f32 %v2716_v58  ;;  %vm994_vm6 = vweird.f32 %v2722_v57  ;;  %v1357_v51 = vsel %vm1351_vm1, %v1354_v15, %v1356_v13  ;;  %v2226_v24 = vpop.eup %2225 }
 0x14f   :  { %v1361_v44 = vsel %vm1351_vm1, %v1358_v36, %v1360_v23  ;;  %v1364_v27 = vsel %vm1352_vm8, %v1346_v45, %v1363_v5  ;;  %v2017_v26 = vadd.s32 4294967169, %v1426_v3  ;;  %vm1101_vm7 = vcmp.lt.s32.totalorder %v3444_v35, 2 }
 0x150   :  { %v2011_v16 = vadd.s32 4294967294, %v1282_v47  ;;  %v1365_v40 = vsel %vm1351_vm1, %v1362_v62, %v1364_v27  ;;  %v3498_v18 = vmul.u32.u64.low %v1366_v20, %v1361_v44  ;;  %v3499_v12 = vmul.u32.u64.high %v1366_v20, %v1361_v44, %v3498_v18 }
 0x151   :  { %v1199_v39 = vsel %vm3464_vm15, 0, %v1197_v50  ;;  %v3504_v30 = vmul.u32.u64.low %v1366_v20, %v1365_v40  ;;  %v3505_v49 = vmul.u32.u64.high %v1366_v20, %v1365_v40, %v3504_v30  ;;  %v1422_v1 = vand.u32 2147483647, %v2741_v60 }
 0x152   :  { %v1198_v45 = vsel %vm3464_vm15, %v2728_v48, %v1195_v56  ;;  %v1270_v29 = vadd.s32 %v3405_v17, %v3403_v7  ;;  %vm2012_vm9 = vcmp.lt.s32.totalorder %v2011_v16, 0  ;;  %v1432_v10 = vadd.s32 1, %v2017_v26 }
 0x153   :  { %v1103_v25 = vxor.u32 2147483648, %v2226_v24  ;;  %v1106_v8 = vxor.u32 2147483648, %v2224_v2  ;;  %v1285_v15 = vsel %vm2012_vm9, 0, %v2011_v16  ;;  %v1373_v3 = vmul.u32 %v1366_v20, %v1357_v51 }
 0x154   :  { %v1286_v59 = vsub.s32 32, %v1285_v15  ;;  %v1287_v0 = vshll.u32 %v3473_v37, %v1285_v15  ;;  %v1290_v36 = vsub.s32 4294967266, %v1285_v15  ;;  %v1376_v52 = vadd.s32 1, %v3499_v12 }
 0x155   :  { %2227 = vcosq.f32 %v1198_v45  ;;  %v1203_v13 = vadd.s32 3, %v1199_v39  ;;  %vm1375_vm10 = vc.u32 %v3505_v49, %v3498_v18  ;;  %vm1433_vm12 = vcmp.gt.s32.totalorder %v1432_v10, 0 }
 0x156   :  { %v1288_v28 = vshrl.u32 %v1270_v29, %v1286_v59  ;;  %v1291_v7 = vadd.s32 127, %v1290_v36  ;;  %v1377_v17 = vsel %vm1375_vm10, %v1376_v52, %v3499_v12  ;;  %v1434_v23 = vsel %vm1433_vm12, %v1432_v10, 0 }
 0x157   :  { %v1300_v62 = vsub.s32 4, %v3449_v43  ;;  %v1378_v20 = vadd.s32 %v1377_v17, %v1373_v3  ;;  %v1429_v37 = vand.u32 8388607, %v1422_v1  ;;  %v1436_v5 = vand.u32 31, %v1434_v23 }
 0x158   :  { %v1104_v56 = vsel %vm1102_vm3, %v2224_v2, %v1103_v25  ;;  %v1107_v50 = vsel %vm1105_vm4, %v1106_v8, %v2226_v24  ;;  %v1289_v47 = vor.u32 %v1288_v28, %v1287_v0  ;;  %v1292_v51 = vshll.u32 %v1291_v7, 23 }
 0x159   :  { %vm3527_vm13 = vcmp.le.f32.partialorder %v1214_v53, 0.7853982  ;;  %vm1216_vm14 = vcmp.lt.s32.totalorder %v2731_v4, 0  ;;  %v1379_v27 = vadd.s32 536870912, %v1378_v20  ;;  %v1437_v26 = vsub.s32 32, %v1436_v5 }
 0x15a   :  { %v3535_v16 = vsel %vm890_vm5, nan, %v3442_v63  ;;  %v3539_v2 = vsel %vm994_vm6, nan, %v1004_v42  ;;  %v3541_v24 = vand.u32 3, %v1203_v13  ;;  %v1293_v40 = vor.u32 4788187, %v1292_v51 }
 0x15b   :  { %v3545_v53 = vsel %vm1101_vm7, %v1104_v56, %v1107_v50  ;;  %v1296_v12 = vcvt.s32.f32 %v1289_v47  ;;  %v3550_v39 = vsel %vm1216_vm14, %v1300_v62, %v3449_v43  ;;  %v3552_v58 = vshrl.u32 %v1379_v27, 30 }
 0x15c   :  { %2229 = vsinq.f32 %v1198_v45  ;;  %v1294_v63 = vand.u32 2147483647, %v1293_v40  ;;  %v1430_v57 = vor.u32 8388608, %v1429_v37  ;;  %v1439_v42 = vshll.u32 %v4022_v11, %v1436_v5 }
 0x15d   :  { %v1381_v30 = vshll.u32 %v3552_v58, 30  ;;  %v1440_v29 = vshrl.u32 %v4023_v61, %v1437_v26  ;;  %v1442_v35 = vshll.u32 %v4023_v61, %v1436_v5  ;;  %v1443_v10 = vshrl.u32 %v4024_v41, %v1437_v26 }
 0x15e   :  { %v1435_v25 = vshrl.u32 %v1434_v23, 5  ;;  %v1445_v8 = vshll.u32 %v4024_v41, %v1436_v5  ;;  %v1446_v43 = vshrl.u32 %v4025_v9, %v1437_v26  ;;  %v1448_v15 = vshll.u32 %v4025_v9, %v1436_v5 }
 0x15f   :  { %v1297_v45 = vmul.f32 %v1296_v12, %v1294_v63  ;;  %v3562_v3 = vsub.s32 %v1378_v20, %v1381_v30  ;;  %v1449_v59 = vshrl.u32 %v4016_v14, %v1437_v26  ;;  %v1451_v0 = vshll.u32 %v4016_v14, %v1436_v5 }
 0x160   :  { %v1303_v36 = vsel %vm3527_vm13, 0, %v3550_v39  ;;  %v1452_v52 = vshrl.u32 %v4017_v6, %v1437_v26  ;;  %v1526_v13 = vand.u32 2147483647, %v2743_v55  ;;  %v1529_v28 = vand.u32 2139095040, %v2743_v55 }
 0x161   :  { %v1384_v7 = vsub.s32 0, %v3562_v3  ;;  %v1438_v17 = vshrl.u32 %v4022_v11, %v1437_v26  ;;  %v1441_v23 = vor.u32 %v1440_v29, %v1439_v42  ;;  %v1444_v62 = vor.u32 %v1443_v10, %v1442_v35 }
 0x162   :  { %v3574_v20 = vpop.eup %2227  ;;  %v1447_v37 = vor.u32 %v1446_v43, %v1445_v8  ;;  %v1450_v5 = vor.u32 %v1449_v59, %v1448_v15  ;;  %vm1454_vm11 = vcmp.lt.s32.totalorder %v1435_v25, 1  ;;  %v3576_v56 = vshll.u32 %v1430_v57, 8 }
 0x163   :  { %v1298_v50 = vxor.u32 2147483648, %v1297_v45  ;;  %v2014_v47 = vmin.u32 %v1384_v7, %v3562_v3  ;;  %v1453_v51 = vor.u32 %v1452_v52, %v1451_v0  ;;  %vm1457_vm15 = vcmp.lt.s32.totalorder %v1435_v25, 4 }
 0x164   :  { %vm1209_vm0 = vcmp.eq.s32.totalorder %v3541_v24, 2  ;;  %v1374_v27 = vadd.s32 %v3498_v18, %v3505_v49  ;;  %vm1456_vm8 = vcmp.lt.s32.totalorder %v1435_v25, 3  ;;  %v1459_v26 = vsel %vm1457_vm15, %v1447_v37, 2102212464 }
 0x165   :  { %v1530_v40 = vshrl.u32 %v1529_v28, 23  ;;  %vm1206_vm1 = vcmp.eq.s32.totalorder %v3541_v24, 0  ;;  %vm1320_vm2 = vcmp.lt.s32.totalorder %v2738_v32, 0  ;;  %v1386_v12 = vclz %v2014_v47 }
 0x166   :  { %vm1455_vm3 = vcmp.lt.s32.totalorder %v1435_v25, 2  ;;  %v1458_v63 = vsel %vm1454_vm11, %v1438_v17, %v1441_v23  ;;  %v1462_v57 = vsel %vm1454_vm11, %v1441_v23, %v1444_v62  ;;  %v1210_v42 = vxor.u32 2147483648, %v3574_v20 }
 0x167   :  { %v1460_v30 = vsel %vm1456_vm8, %v1444_v62, %v1459_v26  ;;  %v1463_v18 = vsel %vm1457_vm15, %v1450_v5, 920167782  ;;  %v1466_v49 = vsel %vm1454_vm11, %v1444_v62, %v1447_v37  ;;  %vm1098_vm4 = vweird.f32 %v2725_v19 }
 0x168   :  { %v1299_v29 = vsel %vm1216_vm14, %v1298_v50, %v1297_v45  ;;  %v2015_v35 = vadd.s32 4294967294, %v1386_v12  ;;  %v1464_v10 = vsel %vm1456_vm8, %v1447_v37, %v1463_v18  ;;  %v1467_v8 = vsel %vm1457_vm15, %v1453_v51, 1326507024 }
 0x169   :  { %vm1205_vm5 = vcmp.lt.s32.totalorder %v3541_v24, 2  ;;  %vm3599_vm6 = vcmp.le.f32.partialorder %v1318_v21, 0.7853982  ;;  %v1461_v15 = vsel %vm1455_vm3, %v1458_v63, %v1460_v30  ;;  %v1465_v59 = vsel %vm1455_vm3, %v1462_v57, %v1464_v10  ;;  %v2230_v52 = vpop.eup %2229 }
 0x16a   :  { %v1468_v0 = vsel %vm1456_vm8, %v1450_v5, %v1467_v8  ;;  %v2021_v45 = vadd.s32 4294967169, %v1530_v40  ;;  %vm2016_vm7 = vcmp.lt.s32.totalorder %v2015_v35, 0  ;;  %v1404_v23 = vsub.s32 4, %v3552_v58 }
 0x16b   :  { %v1469_v28 = vsel %vm1455_vm3, %v1466_v49, %v1468_v0  ;;  %v3608_v7 = vmul.u32.u64.low %v3576_v56, %v1465_v59  ;;  %v3609_v17 = vmul.u32.u64.high %v3576_v56, %v1465_v59, %v3608_v7  ;;  %v1389_v21 = vsel %vm2016_vm7, 0, %v2015_v35 }
 0x16c   :  { %v3614_v62 = vmul.u32.u64.low %v3576_v56, %v1469_v28  ;;  %v3615_v37 = vmul.u32.u64.high %v3576_v56, %v1469_v28, %v3614_v62  ;;  %v1390_v50 = vsub.s32 32, %v1389_v21  ;;  %v1391_v5 = vshll.u32 %v3562_v3, %v1389_v21 }
 0x16d   :  { %v1394_v47 = vsub.s32 4294967266, %v1389_v21  ;;  %v1536_v51 = vadd.s32 1, %v2021_v45  ;;  %v1207_v26 = vxor.u32 2147483648, %v2230_v52  ;;  %v1302_v25 = vsel %vm3527_vm13, %v2731_v4, %v1299_v29 }
 0x16e   :  { %v1477_v40 = vmul.u32 %v3576_v56, %v1461_v15  ;;  %v1533_v12 = vand.u32 8388607, %v1526_v13  ;;  %v1392_v63 = vshrl.u32 %v1374_v27, %v1390_v50  ;;  %v1480_v30 = vadd.s32 1, %v3609_v17 }
 0x16f   :  { %v1395_v57 = vadd.s32 127, %v1394_v47  ;;  %vm1537_vm9 = vcmp.gt.s32.totalorder %v1536_v51, 0  ;;  %v1307_v3 = vadd.s32 3, %v1303_v36  ;;  %v1405_v18 = vsel %vm1320_vm2, %v1404_v23, %v3552_v58 }
 0x170   :  { %vm1479_vm10 = vc.u32 %v3615_v37, %v3608_v7  ;;  %v1538_v56 = vsel %vm1537_vm9, %v1536_v51, 0  ;;  %v1211_v27 = vsel %vm1209_vm0, %v1210_v42, %v2230_v52  ;;  %v1393_v49 = vor.u32 %v1392_v63, %v1391_v5 }
 0x171   :  { %v1396_v29 = vshll.u32 %v1395_v57, 23  ;;  %v1481_v35 = vsel %vm1479_vm10, %v1480_v30, %v3609_v17  ;;  %v1208_v44 = vsel %vm1206_vm1, %v3574_v20, %v1207_v26  ;;  %2231 = vcosq.f32 %v1302_v25 }
 0x172   :  { %v1482_v39 = vadd.s32 %v1481_v35, %v1477_v40  ;;  %v1540_v36 = vand.u32 31, %v1538_v56  ;;  %v1400_v58 = vcvt.s32.f32 %v1393_v49  ;;  %v1407_v8 = vsel %vm3599_vm6, 0, %v1405_v18 }
 0x173   :  { %v1397_v10 = vor.u32 4788187, %v1396_v29  ;;  %v1534_v15 = vor.u32 8388608, %v1533_v12  ;;  %v3645_v42 = vsel %vm1098_vm4, nan, %v3545_v53  ;;  %2233 = vsinq.f32 %v1302_v25 }
 0x174   :  { %v1483_v59 = vadd.s32 536870912, %v1482_v39  ;;  %v1541_v0 = vsub.s32 32, %v1540_v36  ;;  %v3649_v20 = vsel %vm1205_vm5, %v1208_v44, %v1211_v27  ;;  %v3651_v45 = vand.u32 3, %v1307_v3 }
 0x175   :  { %v1398_v52 = vand.u32 2147483647, %v1397_v10  ;;  %v3653_v28 = vshrl.u32 %v1538_v56, 5  ;;  %v3655_v17 = vadd.s32 3, %v1407_v8  ;;  %v1543_v19 = vshll.u32 %v4022_v11, %v1540_v36 }
 0x176   :  { %v3657_v21 = vshrl.u32 %v1483_v59, 30  ;;  %v1544_v53 = vshrl.u32 %v4023_v61, %v1541_v0  ;;  %v1546_v62 = vshll.u32 %v4023_v61, %v1540_v36  ;;  %v1547_v24 = vshrl.u32 %v4024_v41, %v1541_v0 }
 0x177   :  { %v1401_v23 = vmul.f32 %v1400_v58, %v1398_v52  ;;  %v3663_v50 = vshll.u32 %v1534_v15, 8  ;;  %v1549_v47 = vshll.u32 %v4024_v41, %v1540_v36  ;;  %v1550_v51 = vshrl.u32 %v4025_v9, %v1541_v0 }
 0x178   :  { %v1485_v5 = vshll.u32 %v3657_v21, 30  ;;  %v1630_v26 = vand.u32 2147483647, %v2746_v54  ;;  %v1542_v40 = vshrl.u32 %v4022_v11, %v1541_v0  ;;  %vm1558_vm12 = vcmp.lt.s32.totalorder %v3653_v28, 1 }
 0x179   :  { %v1402_v25 = vxor.u32 2147483648, %v1401_v23  ;;  %v1633_v12 = vand.u32 2139095040, %v2746_v54  ;;  %v1545_v57 = vor.u32 %v1544_v53, %v1543_v19  ;;  %v1552_v30 = vshll.u32 %v4025_v9, %v1540_v36 }
 0x17a   :  { %v3672_v63 = vsub.s32 %v1482_v39, %v1485_v5  ;;  %v1553_v3 = vshrl.u32 %v4016_v14, %v1541_v0  ;;  %v1548_v56 = vor.u32 %v1547_v24, %v1546_v62  ;;  %v1555_v27 = vshll.u32 %v4016_v14, %v1540_v36 }
 0x17b   :  { %v1403_v18 = vsel %vm1320_vm2, %v1402_v25, %v1401_v23  ;;  %v1556_v49 = vshrl.u32 %v4017_v6, %v1541_v0  ;;  %vm1313_vm13 = vcmp.eq.s32.totalorder %v3651_v45, 2  ;;  %vm1424_vm14 = vcmp.lt.s32.totalorder %v2741_v60, 0 }
 0x17c   :  { %v1406_v29 = vsel %vm3599_vm6, %v2738_v32, %v1403_v18  ;;  %v1488_v35 = vsub.s32 0, %v3672_v63  ;;  %v1551_v44 = vor.u32 %v1550_v51, %v1549_v47  ;;  %v1554_v39 = vor.u32 %v1553_v3, %v1552_v30 }
 0x17d   :  { %vm1310_vm11 = vcmp.eq.s32.totalorder %v3651_v45, 0  ;;  %v1478_v10 = vadd.s32 %v3608_v7, %v3615_v37  ;;  %v1557_v36 = vor.u32 %v1556_v49, %v1555_v27  ;;  %vm1561_vm15 = vcmp.lt.s32.totalorder %v3653_v28, 4 }
 0x17e   :  { %v1634_v58 = vshrl.u32 %v1633_v12, 23  ;;  %v2018_v8 = vmin.u32 %v1488_v35, %v3672_v63  ;;  %v1508_v43 = vsub.s32 4, %v3657_v21  ;;  %vm1559_vm0 = vcmp.lt.s32.totalorder %v3653_v28, 2  ;;  %v2232_v15 = vpop.eup %2231 }
 0x17f   :  { %vm1560_vm8 = vcmp.lt.s32.totalorder %v3653_v28, 3  ;;  %2235 = vcosq.f32 %v1406_v29  ;;  %v1563_v59 = vsel %vm1561_vm15, %v1551_v44, 2102212464  ;;  %v1566_v7 = vsel %vm1558_vm12, %v1545_v57, %v1548_v56 }
 0x180   :  { %v1567_v37 = vsel %vm1561_vm15, %v1554_v39, 920167782  ;;  %vm1309_vm1 = vcmp.lt.s32.totalorder %v3651_v45, 2  ;;  %2237 = vsinq.f32 %v1406_v29  ;;  %vm3703_vm2 = vcmp.le.f32.partialorder %v1422_v1, 0.7853982  ;;  %v2234_v23 = vpop.eup %2233 }
 0x181   :  { %v1490_v52 = vclz %v2018_v8  ;;  %v1562_v19 = vsel %vm1558_vm12, %v1542_v40, %v1545_v57  ;;  %v1570_v53 = vsel %vm1558_vm12, %v1548_v56, %v1551_v44  ;;  %v1564_v62 = vsel %vm1560_vm8, %v1548_v56, %v1563_v59 }
 0x182   :  { %v1568_v24 = vsel %vm1560_vm8, %v1551_v44, %v1567_v37  ;;  %v1571_v1 = vsel %vm1561_vm15, %v1557_v36, 1326507024  ;;  %v2025_v5 = vadd.s32 4294967169, %v1634_v58  ;;  %v1314_v47 = vxor.u32 2147483648, %v2232_v15 }
 0x183   :  { %v2019_v51 = vadd.s32 4294967294, %v1490_v52  ;;  %v1569_v25 = vsel %vm1559_vm0, %v1566_v7, %v1568_v24  ;;  %v1572_v40 = vsel %vm1560_vm8, %v1554_v39, %v1571_v1  ;;  %v1565_v12 = vsel %vm1559_vm0, %v1562_v19, %v1564_v62  ;;  %v4053_v62 = vld [vmem:[#allocation17_spill] sm:$0xff] }
 0x184   :  { %v1573_v57 = vsel %vm1559_vm0, %v1570_v53, %v1572_v40  ;;  %v3726_v30 = vmul.u32.u64.low %v3663_v50, %v1569_v25  ;;  %v3727_v3 = vmul.u32.u64.high %v3663_v50, %v1569_v25, %v3726_v30  ;;  %v1311_v18 = vxor.u32 2147483648, %v2234_v23 }
 0x185   :  { %vm2020_vm3 = vcmp.lt.s32.totalorder %v2019_v51, 0  ;;  %v3730_v56 = vmul.u32.u64.low %v3663_v50, %v1573_v57  ;;  %v3731_v27 = vmul.u32.u64.high %v3663_v50, %v1573_v57, %v3730_v56  ;;  %v1509_v29 = vsel %vm1424_vm14, %v1508_v43, %v3657_v21 }
 0x186   :  { %v1493_v49 = vsel %vm2020_vm3, 0, %v2019_v51  ;;  %v1637_v35 = vand.u32 8388607, %v1630_v26  ;;  %v1640_v28 = vadd.s32 1, %v2025_v5  ;;  %v1581_v58 = vmul.u32 %v3663_v50, %v1565_v12 }
 0x187   :  { %v1494_v44 = vsub.s32 32, %v1493_v49  ;;  %v1495_v39 = vshll.u32 %v3672_v63, %v1493_v49  ;;  %v1498_v36 = vsub.s32 4294967266, %v1493_v49  ;;  %v1315_v8 = vsel %vm1313_vm13, %v1314_v47, %v2234_v23 }
 0x188   :  { %v3743_v59 = vand.u32 3, %v3655_v17  ;;  %v1584_v7 = vadd.s32 1, %v3727_v3  ;;  %vm1641_vm4 = vcmp.gt.s32.totalorder %v1640_v28, 0  ;;  %v1312_v21 = vsel %vm1310_vm11, %v2232_v15, %v1311_v18 }
 0x189   :  { %v1496_v43 = vshrl.u32 %v1478_v10, %v1494_v44  ;;  %v1499_v37 = vadd.s32 127, %v1498_v36  ;;  %vm1583_vm5 = vc.u32 %v3731_v27, %v3726_v30  ;;  %v1511_v63 = vsel %vm3703_vm2, 0, %v1509_v29 }
 0x18a   :  { %v1585_v50 = vsel %vm1583_vm5, %v1584_v7, %v3727_v3  ;;  %v1638_v52 = vor.u32 8388608, %v1637_v35  ;;  %v1642_v19 = vsel %vm1641_vm4, %v1640_v28, 0  ;;  %v4007_v24 = vand.u32 2147483647, %v4053_v62 }
 0x18b   :  { %v1497_v53 = vor.u32 %v1496_v43, %v1495_v39  ;;  %v1500_v17 = vshll.u32 %v1499_v37, 23  ;;  %v1586_v23 = vadd.s32 %v1585_v50, %v1581_v58  ;;  %v3755_v1 = vsel %vm1309_vm1, %v1312_v21, %v1315_v8 }
 0x18c   :  { %vm1414_vm6 = vcmp.eq.s32.totalorder %v3743_v59, 0  ;;  %vm1417_vm7 = vcmp.eq.s32.totalorder %v3743_v59, 2  ;;  %v1644_v10 = vand.u32 31, %v1642_v19  ;;  %v2236_v15 = vpop.eup %2235  ;;  %v3759_v51 = vadd.s32 3, %v1511_v63 }
 0x18d   :  { %v1501_v5 = vor.u32 4788187, %v1500_v17  ;;  %v1504_v47 = vcvt.s32.f32 %v1497_v53  ;;  %v1587_v25 = vadd.s32 536870912, %v1586_v23  ;;  %v2238_v40 = vpop.eup %2237  ;;  %v3762_v12 = vadd.s32 %v3726_v30, %v3731_v27 }
 0x18e   :  { %v1645_v57 = vsub.s32 32, %v1644_v10  ;;  %v3764_v3 = vshll.u32 %v1638_v52, 8  ;;  %v1737_v45 = vand.u32 2139095040, %v4053_v62  ;;  %vm1528_vm9 = vcmp.lt.s32.totalorder %v2743_v55, 0 }
 0x18f   :  { %v1502_v18 = vand.u32 2147483647, %v1501_v5  ;;  %v1588_v56 = vshrl.u32 %v1587_v25, 30  ;;  %v1643_v49 = vshrl.u32 %v1642_v19, 5  ;;  %v3770_v29 = vand.u32 8388607, %v4007_v24 }
 0x190   :  { %v1418_v35 = vxor.u32 2147483648, %v2236_v15  ;;  %v1647_v28 = vshll.u32 %v4022_v11, %v1644_v10  ;;  %v1648_v30 = vshrl.u32 %v4023_v61, %v1645_v57  ;;  %v1650_v27 = vshll.u32 %v4023_v61, %v1644_v10 }
 0x191   :  { %v1505_v44 = vmul.f32 %v1504_v47, %v1502_v18  ;;  %v1589_v39 = vshll.u32 %v1588_v56, 30  ;;  %v1651_v36 = vshrl.u32 %v4024_v41, %v1645_v57  ;;  %v1653_v58 = vshll.u32 %v4024_v41, %v1644_v10 }
 0x192   :  { %v1415_v8 = vxor.u32 2147483648, %v2238_v40  ;;  %v1654_v7 = vshrl.u32 %v4025_v9, %v1645_v57  ;;  %v1656_v21 = vshll.u32 %v4025_v9, %v1644_v10  ;;  %v1738_v43 = vshrl.u32 %v1737_v45, 23 }
 0x193   :  { %v1506_v37 = vxor.u32 2147483648, %v1505_v44  ;;  %vm3781_vm10 = vcmp.le.f32.partialorder %v1526_v13, 0.7853982  ;;  %v3785_v50 = vsub.s32 %v1586_v23, %v1589_v39  ;;  %v1646_v52 = vshrl.u32 %v4022_v11, %v1645_v57 }
 0x194   :  { %v1657_v19 = vshrl.u32 %v4016_v14, %v1645_v57  ;;  %v1612_v53 = vsub.s32 4, %v1588_v56  ;;  %v1649_v17 = vor.u32 %v1648_v30, %v1647_v28  ;;  %v1659_v5 = vshll.u32 %v4016_v14, %v1644_v10 }
 0x195   :  { %v1660_v47 = vshrl.u32 %v4017_v6, %v1645_v57  ;;  %vm1413_vm12 = vcmp.lt.s32.totalorder %v3743_v59, 2  ;;  %v1507_v13 = vsel %vm1424_vm14, %v1506_v37, %v1505_v44  ;;  %v1592_v25 = vsub.s32 0, %v3785_v50 }
 0x196   :  { %v1652_v45 = vor.u32 %v1651_v36, %v1650_v27  ;;  %v1655_v23 = vor.u32 %v1654_v7, %v1653_v58  ;;  %v1510_v18 = vsel %vm3703_vm2, %v2741_v60, %v1507_v13  ;;  %v1658_v39 = vor.u32 %v1657_v19, %v1656_v21 }
 0x197   :  { %v1661_v24 = vor.u32 %v1660_v47, %v1659_v5  ;;  %vm1662_vm13 = vcmp.lt.s32.totalorder %v1643_v49, 1  ;;  %vm1202_vm11 = vweird.f32 %v2728_v48  ;;  %vm1306_vm15 = vweird.f32 %v2731_v4 }
 0x198   :  { %v1416_v10 = vsel %vm1414_vm6, %v2236_v15, %v1415_v8  ;;  %v1419_v57 = vsel %vm1417_vm7, %v1418_v35, %v2238_v40  ;;  %2239 = vcosq.f32 %v1510_v18  ;;  %v2022_v28 = vmin.u32 %v1592_v25, %v3785_v50 }
 0x199   :  { %2241 = vsinq.f32 %v1510_v18  ;;  %v1613_v0 = vsel %vm1528_vm9, %v1612_v53, %v1588_v56  ;;  %vm1664_vm14 = vcmp.lt.s32.totalorder %v1643_v49, 3  ;;  %vm1665_vm0 = vcmp.lt.s32.totalorder %v1643_v49, 4 }
 0x19a   :  { %vm1410_vm8 = vweird.f32 %v2738_v32  ;;  %v1594_v30 = vclz %v2022_v28  ;;  %vm1663_vm1 = vcmp.lt.s32.totalorder %v1643_v49, 2  ;;  %v1666_v27 = vsel %vm1662_vm13, %v1646_v52, %v1649_v17 }
 0x19b   :  { %v1670_v15 = vsel %vm1662_vm13, %v1649_v17, %v1652_v45  ;;  %v1667_v44 = vsel %vm1665_vm0, %v1655_v23, 2102212464  ;;  %v1671_v36 = vsel %vm1665_vm0, %v1658_v39, 920167782  ;;  %v1674_v40 = vsel %vm1662_vm13, %v1652_v45, %v1655_v23 }
 0x19c   :  { %v1675_v35 = vsel %vm1665_vm0, %v1661_v24, 1326507024  ;;  %v2023_v58 = vadd.s32 4294967294, %v1594_v30  ;;  %v1668_v8 = vsel %vm1664_vm14, %v1652_v45, %v1667_v44  ;;  %v1672_v7 = vsel %vm1664_vm14, %v1655_v23, %v1671_v36 }
 0x19d   :  { %v1676_v21 = vsel %vm1664_vm14, %v1658_v39, %v1675_v35  ;;  %v1615_v56 = vsel %vm3781_vm10, 0, %v1613_v0  ;;  %v1673_v37 = vsel %vm1663_vm1, %v1670_v15, %v1672_v7  ;;  %v2029_v53 = vadd.s32 4294967169, %v1738_v43 }
 0x19e   :  { %v1677_v19 = vsel %vm1663_vm1, %v1674_v40, %v1676_v21  ;;  %vm2024_vm2 = vcmp.lt.s32.totalorder %v2023_v58, 0  ;;  %v1669_v52 = vsel %vm1663_vm1, %v1666_v27, %v1668_v8  ;;  %v3825_v45 = vand.u32 3, %v3759_v51 }
 0x19f   :  { %v3817_v17 = vmul.u32.u64.low %v3764_v3, %v1677_v19  ;;  %v3818_v5 = vmul.u32.u64.high %v3764_v3, %v1677_v19, %v3817_v17  ;;  %v1597_v24 = vsel %vm2024_vm2, 0, %v2023_v58  ;;  %v1744_v25 = vadd.s32 1, %v2029_v53 }
 0x1a0   :  { %v3821_v47 = vmul.u32.u64.low %v3764_v3, %v1673_v37  ;;  %v3822_v13 = vmul.u32.u64.high %v3764_v3, %v1673_v37, %v3821_v47  ;;  %v1598_v23 = vsub.s32 32, %v1597_v24  ;;  %v1599_v18 = vshll.u32 %v3785_v50, %v1597_v24 }
 0x1a1   :  { %v1602_v43 = vsub.s32 4294967266, %v1597_v24  ;;  %v1420_v49 = vsel %vm1413_vm12, %v1416_v10, %v1419_v57  ;;  %v1619_v39 = vadd.s32 3, %v1615_v56  ;;  %v1742_v28 = vor.u32 8388608, %v3770_v29  ;;  %v93_v10 = vld [vmem:[#allocation7] sm:$0xff]  ;;  %v95_v56 = vld [vmem:[#allocation7 + $0x10] sm:$0xff] }
 0x1a2   :  { %vm1745_vm3 = vcmp.gt.s32.totalorder %v1744_v25, 0  ;;  %v1600_v0 = vshrl.u32 %v3762_v12, %v1598_v23  ;;  %v1685_v27 = vmul.u32 %v3764_v3, %v1669_v52  ;;  %vm1687_vm4 = vc.u32 %v3818_v5, %v3821_v47  ;;  %v94_v12 = vld [vmem:[#allocation7 + $0x8] sm:$0xff] }
 0x1a3   :  { %v1603_v30 = vadd.s32 127, %v1602_v43  ;;  %v3837_v51 = vsel %vm1202_vm11, nan, %v3649_v20  ;;  %v3842_v59 = vsel %vm1306_vm15, nan, %v3755_v1  ;;  %v1688_v29 = vadd.s32 1, %v3822_v13 }
 0x1a4   :  { %v1746_v50 = vsel %vm1745_vm3, %v1744_v25, 0  ;;  %vm1518_vm5 = vcmp.eq.s32.totalorder %v3825_v45, 0  ;;  %v1601_v3 = vor.u32 %v1600_v0, %v1599_v18  ;;  %v3848_v48 = vsel %vm1410_vm8, nan, %v1420_v49 }
 0x1a5   :  { %v1604_v57 = vshll.u32 %v1603_v30, 23  ;;  %v1748_v15 = vand.u32 31, %v1746_v50  ;;  %v2240_v44 = vpop.eup %2239  ;;  %vm1517_vm6 = vcmp.lt.s32.totalorder %v3825_v45, 2  ;;  %vm1521_vm7 = vcmp.eq.s32.totalorder %v3825_v45, 2 }
 0x1a6   :  { %v3852_v4 = vand.u32 3, %v1619_v39  ;;  %v1689_v20 = vsel %vm1687_vm4, %v1688_v29, %v3822_v13  ;;  %v2242_v1 = vpop.eup %2241  ;;  %v1608_v40 = vcvt.s32.f32 %v1601_v3  ;;  %v3857_v58 = vshll.u32 %v1742_v28, 8 }
 0x1a7   :  { %v1605_v36 = vor.u32 4788187, %v1604_v57  ;;  %v1690_v35 = vadd.s32 %v1689_v20, %v1685_v27  ;;  %v1522_v8 = vxor.u32 2147483648, %v2240_v44  ;;  %v1749_v32 = vsub.s32 32, %v1748_v15 }
 0x1a8   :  { %v3860_v7 = vmul.f32 %v3017_v22, %v93_v10  ;;  %v3863_v21 = vmul.f32 %v3021_v38, %v94_v12  ;;  %v1519_v37 = vxor.u32 2147483648, %v2242_v1  ;;  %v3866_v53 = vadd.s32 %v3821_v47, %v3818_v5 }
 0x1a9   :  { %v1606_v19 = vand.u32 2147483647, %v1605_v36  ;;  %v1691_v52 = vadd.s32 536870912, %v1690_v35  ;;  %v1751_v17 = vshll.u32 %v4022_v11, %v1748_v15  ;;  %v1752_v24 = vshrl.u32 %v4023_v61, %v1749_v32 }
 0x1aa   :  { %v1754_v13 = vshll.u32 %v4023_v61, %v1748_v15  ;;  %v1757_v25 = vshll.u32 %v4024_v41, %v1748_v15  ;;  %vm1514_vm12 = vweird.f32 %v2741_v60  ;;  %v1755_v23 = vshrl.u32 %v4024_v41, %v1749_v32 }
 0x1ab   :  { %v1609_v22 = vmul.f32 %v1608_v40, %v1606_v19  ;;  %v3873_v38 = vshrl.u32 %v1691_v52, 30  ;;  %v1758_v18 = vshrl.u32 %v4025_v9, %v1749_v32  ;;  %v1523_v5 = vsel %vm1521_vm7, %v1522_v8, %v2242_v1 }
 0x1ac   :  { %v1747_v47 = vshrl.u32 %v1746_v50, 5  ;;  %v1760_v43 = vshll.u32 %v4025_v9, %v1748_v15  ;;  %v3881_v49 = vmul.f32 %v3217_v46, %v95_v56  ;;  %v1520_v61 = vsel %vm1518_vm5, %v2240_v44, %v1519_v37  ;;  %v98_v44 = vld [vmem:[#allocation7 + $0x28] sm:$0xff]  ;;  %v99_v56 = vld [vmem:[#allocation7 + $0x30] sm:$0xff]  ;;  %v100_v37 = vld [vmem:[#allocation7 + $0x38] sm:$0xff] }
 0x1ad   :  { %v1610_v39 = vxor.u32 2147483648, %v1609_v22  ;;  %v1693_v28 = vshll.u32 %v3873_v38, 30  ;;  %v1750_v0 = vshrl.u32 %v4022_v11, %v1749_v32  ;;  %v1753_v41 = vor.u32 %v1752_v24, %v1751_v17 }
 0x1ae   :  { %v1761_v30 = vshrl.u32 %v4016_v14, %v1749_v32  ;;  %v1763_v27 = vshll.u32 %v4016_v14, %v1748_v15  ;;  %v1764_v29 = vshrl.u32 %v4017_v6, %v1749_v32  ;;  %v1756_v50 = vor.u32 %v1755_v23, %v1754_v13  ;;  %v96_v6 = vld [vmem:[#allocation7 + $0x18] sm:$0xff]  ;;  %v97_v15 = vld [vmem:[#allocation7 + $0x20] sm:$0xff] }
 0x1af   :  { %v1611_v9 = vsel %vm1528_vm9, %v1610_v39, %v1609_v22  ;;  %v3892_v46 = vsub.s32 %v1690_v35, %v1693_v28  ;;  %v1759_v10 = vor.u32 %v1758_v18, %v1757_v25  ;;  %vm1766_vm13 = vcmp.lt.s32.totalorder %v1747_v47, 1  ;;  %v101_v13 = vld [vmem:[#allocation7 + $0x40] sm:$0xff]  ;;  %v102_v25 = vld [vmem:[#allocation7 + $0x48] sm:$0xff] }
 0x1b0   :  { %v1614_v12 = vsel %vm3781_vm10, %v2743_v55, %v1611_v9  ;;  %v1762_v3 = vor.u32 %v1761_v30, %v1760_v43  ;;  %v1765_v11 = vor.u32 %v1764_v29, %v1763_v27  ;;  %v1524_v57 = vsel %vm1517_vm6, %v1520_v61, %v1523_v5  ;;  %v103_v43 = vld [vmem:[#allocation7 + $0x50] sm:$0xff]  ;;  %v104_v61 = vld [vmem:[#allocation7 + $0x58] sm:$0xff]  ;;  %v77_v27 = vld [vmem:[#allocation4] sm:$0xff] }
 0x1b1   :  { %2243 = vcosq.f32 %v1614_v12  ;;  %v1696_v14 = vsub.s32 0, %v3892_v46  ;;  %vm1768_vm11 = vcmp.lt.s32.totalorder %v1747_v47, 3  ;;  %vm1767_vm9 = vcmp.lt.s32.totalorder %v1747_v47, 2  ;;  %v78_v29 = vld [vmem:[#allocation4 + $0x8] sm:$0xff]  ;;  %v79_v9 = vld [vmem:[#allocation4 + $0x10] sm:$0xff] }
 0x1b2   :  { %2245 = vsinq.f32 %v1614_v12  ;;  %vm1769_vm15 = vcmp.lt.s32.totalorder %v1747_v47, 4  ;;  %v1770_v20 = vsel %vm1766_vm13, %v1750_v0, %v1753_v41  ;;  %v1774_v36 = vsel %vm1766_vm13, %v1753_v41, %v1756_v50  ;;  %v80_v12 = vld [vmem:[#allocation4 + $0x18] sm:$0xff] }
 0x1b3   :  { %v2026_v63 = vmin.u32 %v1696_v14, %v3892_v46  ;;  %v1771_v1 = vsel %vm1769_vm15, %v1759_v10, 2102212464  ;;  %v1775_v40 = vsel %vm1769_vm15, %v1762_v3, 920167782  ;;  %v1778_v8 = vsel %vm1766_vm13, %v1756_v50, %v1759_v10  ;;  %v82_v14 = vld [vmem:[#allocation4 + $0x28] sm:$0xff] }
 0x1b4   :  { %v1772_v45 = vsel %vm1768_vm11, %v1756_v50, %v1771_v1  ;;  %v1776_v35 = vsel %vm1768_vm11, %v1759_v10, %v1775_v40  ;;  %v1779_v32 = vsel %vm1769_vm15, %v1765_v11, 1326507024  ;;  %v1841_v52 = vmul.f32 %v3335_v33, %v96_v6  ;;  %v105_v33 = vld [vmem:[#allocation7 + $0x60] sm:$0xff]  ;;  %v83_v6 = vld [vmem:[#allocation4 + $0x30] sm:$0xff]  ;;  %v86_v1 = vld [vmem:[#allocation4 + $0x48] sm:$0xff] }
 0x1b5   :  { %v1698_v19 = vclz %v2026_v63  ;;  %v1842_v17 = vmul.f32 %v3345_v31, %v97_v15  ;;  %v1843_v24 = vmul.f32 %v3349_v34, %v98_v44  ;;  %v1525_v22 = vsel %vm1514_vm12, nan, %v1524_v57  ;;  %v84_v63 = vld [vmem:[#allocation4 + $0x38] sm:$0xff] }
 0x1b6   :  { %vm1625_vm10 = vcmp.eq.s32.totalorder %v3852_v4, 2  ;;  %v1773_v23 = vsel %vm1767_vm9, %v1770_v20, %v1772_v45  ;;  %v1777_v18 = vsel %vm1767_vm9, %v1774_v36, %v1776_v35  ;;  %v1780_v5 = vsel %vm1768_vm11, %v1762_v3, %v1779_v32  ;;  %v88_v32 = vld [vmem:[#allocation4 + $0x58] sm:$0xff] }
 0x1b7   :  { %vm1622_vm14 = vcmp.eq.s32.totalorder %v3852_v4, 0  ;;  %v2027_v31 = vadd.s32 4294967294, %v1698_v19  ;;  %v1781_v34 = vsel %vm1767_vm9, %v1778_v8, %v1780_v5  ;;  %vm1621_vm0 = vcmp.lt.s32.totalorder %v3852_v4, 2  ;;  %v87_v8 = vld [vmem:[#allocation4 + $0x50] sm:$0xff] }
 0x1b8   :  { %v3918_v39 = vmul.u32.u64.low %v3857_v58, %v1777_v18  ;;  %v3919_v60 = vmul.u32.u64.high %v3857_v58, %v1777_v18, %v3918_v39  ;;  %v3924_v28 = vmul.u32.u64.low %v3857_v58, %v1781_v34  ;;  %v3925_v0 = vmul.u32.u64.high %v3857_v58, %v1781_v34, %v3924_v28  ;;  %v106_v34 = vld [vmem:[#allocation7 + $0x68] sm:$0xff] }
 0x1b9   :  { %v1844_v41 = vmul.f32 %v3535_v16, %v99_v56  ;;  %v1845_v30 = vmul.f32 %v3539_v2, %v100_v37  ;;  %vm1618_vm8 = vweird.f32 %v2743_v55  ;;  %vm2028_vm1 = vcmp.lt.s32.totalorder %v2027_v31, 0  ;;  %v81_v2 = vld [vmem:[#allocation4 + $0x20] sm:$0xff] }
 0x1ba   :  { %v1789_v47 = vmul.u32 %v3857_v58, %v1773_v23  ;;  %v1846_v50 = vmul.f32 %v3645_v42, %v101_v13  ;;  %v1847_v10 = vmul.f32 %v3837_v51, %v102_v25  ;;  %v1701_v3 = vsel %vm2028_vm1, 0, %v2027_v31  ;;  %v89_v31 = vld [vmem:[#allocation4 + $0x60] sm:$0xff] }
 0x1bb   :  { %v1848_v11 = vmul.f32 %v3842_v59, %v103_v43  ;;  %v1849_v16 = vmul.f32 %v3848_v48, %v104_v61  ;;  %v1850_v57 = vmul.f32 %v1525_v22, %v105_v33  ;;  %v1702_v15 = vsub.s32 32, %v1701_v3  ;;  %v85_v48 = vld [vmem:[#allocation4 + $0x40] sm:$0xff] }
 0x1bc   :  { %v1703_v44 = vshll.u32 %v3892_v46, %v1701_v3  ;;  %v1706_v20 = vsub.s32 4294967266, %v1701_v3  ;;  %v1792_v58 = vadd.s32 1, %v3919_v60  ;;  %vm1791_vm2 = vc.u32 %v3925_v0, %v3918_v39 }
 0x1bd   :  { %v1854_v42 = vadd.f32 %v3860_v7, %v77_v27  ;;  %v1855_v51 = vadd.f32 %v3863_v21, %v78_v29  ;;  %v1856_v59 = vadd.f32 %v3881_v49, %v79_v9  ;;  %v1704_v36 = vshrl.u32 %v3866_v53, %v1702_v15  ;;  %v90_v9 = vld [vmem:[#allocation4 + $0x68] sm:$0xff] }
 0x1be   :  { %v1707_v40 = vadd.s32 127, %v1706_v20  ;;  %v1793_v46 = vsel %vm1791_vm2, %v1792_v58, %v3919_v60  ;;  %v1857_v45 = vadd.f32 %v1841_v52, %v80_v12  ;;  %v2244_v35 = vpop.eup %2243  ;;  %v1858_v37 = vadd.f32 %v1842_v17, %v81_v2 }
 0x1bf   :  { %v1794_v56 = vadd.s32 %v1793_v46, %v1789_v47  ;;  %v1859_v19 = vadd.f32 %v1843_v24, %v82_v14  ;;  %v1860_v13 = vadd.f32 %v1844_v41, %v83_v6  ;;  %v2246_v7 = vpop.eup %2245  ;;  %v1626_v25 = vxor.u32 2147483648, %v2244_v35 }
 0x1c0   :  { %v1705_v21 = vor.u32 %v1704_v36, %v1703_v44  ;;  %v1708_v22 = vshll.u32 %v1707_v40, 23  ;;  %v1861_v49 = vadd.f32 %v1845_v30, %v84_v63  ;;  %v1623_v23 = vxor.u32 2147483648, %v2246_v7 }
 0x1c1   :  { %v1795_v18 = vadd.s32 536870912, %v1794_v56  ;;  %v1862_v5 = vadd.f32 %v1846_v50, %v85_v48  ;;  %v1863_v53 = vadd.f32 %v1847_v10, %v86_v1  ;;  %v1627_v43 = vsel %vm1625_vm10, %v1626_v25, %v2246_v7 }
 0x1c2   :  { %v1709_v52 = vor.u32 4788187, %v1708_v22  ;;  %v1864_v61 = vadd.f32 %v1848_v11, %v87_v8  ;;  %v1865_v33 = vadd.f32 %v1849_v16, %v88_v32  ;;  %v1624_v17 = vsel %vm1622_vm14, %v2244_v35, %v1623_v23 }
 0x1c3   :  { %v1712_v24 = vcvt.s32.f32 %v1705_v21  ;;  %v1796_v60 = vshrl.u32 %v1795_v18, 30  ;;  %v2068_v28 = vpack.c.bf16 %v1855_v51, %v1854_v42  ;;  %v1628_v41 = vsel %vm1621_vm0, %v1624_v17, %v1627_v43 }
 0x1c4   :  { %v1710_v30 = vand.u32 2147483647, %v1709_v52  ;;  %v2073_v27 = vpack.c.bf16 %v1857_v45, %v1856_v59  ;;  %v2078_v29 = vpack.c.bf16 %v1859_v19, %v1858_v37  ;;  %v1629_v47 = vsel %vm1618_vm8, nan, %v1628_v41 }
 0x1c5   :  { %v1797_v50 = vshll.u32 %v1796_v60, 30  ;;  %2069 = vst [vmem:[#allocation12] sm:$0xff] %v2068_v28   ;;  %v2083_v10 = vpack.c.bf16 %v1861_v49, %v1860_v13  ;;  %v1851_v12 = vmul.f32 %v1629_v47, %v106_v34  ;;  %v1866_v3 = vadd.f32 %v1850_v57, %v89_v31  ;;  %v108_v47 = vld [vmem:[#allocation7 + $0x78] sm:$0xff] }
 0x1c6   :  { %2105 = vst [vmem:[#allocation12 + $0x8] sm:$0xff] %v2073_v27   ;;  %2106 = vst [vmem:[#allocation12 + $0x10] sm:$0xff] %v2078_v29   ;;  %v2088_v11 = vpack.c.bf16 %v1863_v53, %v1862_v5  ;;  %v2093_v16 = vpack.c.bf16 %v1865_v33, %v1864_v61  ;;  %v1713_v2 = vmul.f32 %v1712_v24, %v1710_v30  ;;  %vm1632_vm3 = vcmp.lt.s32.totalorder %v2746_v54, 0  ;;  %v107_v24 = vld [vmem:[#allocation7 + $0x70] sm:$0xff] }
 0x1c7   :  { %v1798_v14 = vsub.s32 %v1794_v56, %v1797_v50  ;;  %2107 = vst [vmem:[#allocation12 + $0x18] sm:$0xff] %v2083_v10   ;;  %v1867_v4 = vadd.f32 %v1851_v12, %v90_v9  ;;  %vm3955_vm4 = vcmp.le.f32.partialorder %v1630_v26, 0.7853982  ;;  %v1790_v42 = vadd.s32 %v3918_v39, %v3925_v0  ;;  %v91_v9 = vld [vmem:[#allocation4 + $0x70] sm:$0xff]  ;;  %v92_v12 = vld [vmem:[#allocation4 + $0x78] sm:$0xff] }
 0x1c8   :  { %2108 = vst [vmem:[#allocation12 + $0x20] sm:$0xff] %v2088_v11   ;;  %2109 = vst [vmem:[#allocation12 + $0x28] sm:$0xff] %v2093_v16   ;;  %v1714_v44 = vxor.u32 2147483648, %v1713_v2  ;;  %v1716_v26 = vsub.s32 4, %v3873_v38  ;;  %vm1736_vm6 = vcmp.lt.s32.totalorder %v4053_v62, 0  ;;  %v1820_v19 = vsub.s32 4, %v1796_v60 }
 0x1c9   :  { %v1800_v6 = vsub.s32 0, %v1798_v14  ;;  %v2098_v15 = vpack.c.bf16 %v1867_v4, %v1866_v3  ;;  %v4058_v7 = vand.u32 2147483647, %v4053_v62  ;;  %vm1722_vm9 = vweird.f32 %v2746_v54 }
 0x1ca   :  { %v1715_v58 = vsel %vm1632_vm3, %v1714_v44, %v1713_v2  ;;  %v1717_v39 = vsel %vm1632_vm3, %v1716_v26, %v3873_v38  ;;  %v1821_v49 = vsel %vm1736_vm6, %v1820_v19, %v1796_v60  ;;  %vm1826_vm0 = vweird.f32 %v4053_v62 }
 0x1cb   :  { %v2030_v55 = vmin.u32 %v1800_v6, %v1798_v14  ;;  %2110 = vst [vmem:[#allocation12 + $0x30] sm:$0xff] %v2098_v15   ;;  %v1718_v51 = vsel %vm3955_vm4, %v2746_v54, %v1715_v58  ;;  %v1719_v56 = vsel %vm3955_vm4, 0, %v1717_v39  ;;  %vm1735_vm7 = vcmp.le.f32.partialorder %v4058_v7, 0.7853982 }
 0x1cc   :  { %2247 = vcosq.f32 %v1718_v51  ;;  %v1723_v13 = vadd.s32 3, %v1719_v56  ;;  %v1823_v5 = vsel %vm1735_vm7, 0, %v1821_v49 }
 0x1cd   :  { %v1802_v20 = vclz %v2030_v55  ;;  %2249 = vsinq.f32 %v1718_v51  ;;  %v1827_v52 = vadd.s32 3, %v1823_v5 }
 0x1ce   :  { %v1724_v18 = vand.u32 3, %v1723_v13 }
 0x1cf   :  { %v2031_v63 = vadd.s32 4294967294, %v1802_v20  ;;  %v1828_v31 = vand.u32 3, %v1827_v52 }
 0x1d0   :  { %vm1726_vm12 = vcmp.eq.s32.totalorder %v1724_v18, 0  ;;  %vm1729_vm13 = vcmp.eq.s32.totalorder %v1724_v18, 2  ;;  %vm1725_vm11 = vcmp.lt.s32.totalorder %v1724_v18, 2 }
 0x1d1   :  { %vm2032_vm5 = vcmp.lt.s32.totalorder %v2031_v63, 0  ;;  %vm1833_vm15 = vcmp.eq.s32.totalorder %v1828_v31, 2  ;;  %vm1830_vm10 = vcmp.eq.s32.totalorder %v1828_v31, 0  ;;  %vm1829_vm14 = vcmp.lt.s32.totalorder %v1828_v31, 2 }
 0x1d2   :  { %v1805_v59 = vsel %vm2032_vm5, 0, %v2031_v63 }
 0x1d3   :  { %v1806_v48 = vsub.s32 32, %v1805_v59  ;;  %v1807_v1 = vshll.u32 %v1798_v14, %v1805_v59  ;;  %v1810_v36 = vsub.s32 4294967266, %v1805_v59 }
 0x1d5   :  { %v1808_v40 = vshrl.u32 %v1790_v42, %v1806_v48  ;;  %v1811_v46 = vadd.s32 127, %v1810_v36 }
 0x1d7   :  { %v1809_v45 = vor.u32 %v1808_v40, %v1807_v1  ;;  %v1812_v35 = vshll.u32 %v1811_v46, 23 }
 0x1d9   :  { %v1813_v0 = vor.u32 4788187, %v1812_v35  ;;  %v1816_v8 = vcvt.s32.f32 %v1809_v45  ;;  %v2248_v22 = vpop.eup %2247 }
 0x1da   :  { %v2250_v23 = vpop.eup %2249  ;;  %v1730_v43 = vxor.u32 2147483648, %v2248_v22 }
 0x1db   :  { %v1814_v32 = vand.u32 2147483647, %v1813_v0  ;;  %v1727_v53 = vxor.u32 2147483648, %v2250_v23 }
 0x1dc   :  { %v1731_v33 = vsel %vm1729_vm13, %v1730_v43, %v2250_v23 }
 0x1dd   :  { %v1817_v37 = vmul.f32 %v1816_v8, %v1814_v32  ;;  %v1728_v61 = vsel %vm1726_vm12, %v2248_v22, %v1727_v53 }
 0x1de   :  { %v1732_v34 = vsel %vm1725_vm11, %v1728_v61, %v1731_v33 }
 0x1df   :  { %v1818_v25 = vxor.u32 2147483648, %v1817_v37  ;;  %v1733_v60 = vsel %vm1722_vm9, nan, %v1732_v34 }
 0x1e0   :  { %v1852_v29 = vmul.f32 %v1733_v60, %v107_v24 }
 0x1e1   :  { %v1819_v21 = vsel %vm1736_vm6, %v1818_v25, %v1817_v37 }
 0x1e2   :  { %v1822_v38 = vsel %vm1735_vm7, %v4053_v62, %v1819_v21  ;;  %v1868_v11 = vadd.f32 %v1852_v29, %v91_v9 }
 0x1e3   :  { %2251 = vcosq.f32 %v1822_v38 }
 0x1e4   :  { %2253 = vsinq.f32 %v1822_v38 }
 0x1f0   :  { %v2252_v17 = vpop.eup %2251 }
 0x1f1   :  { %v2254_v28 = vpop.eup %2253  ;;  %v1834_v41 = vxor.u32 2147483648, %v2252_v17 }
 0x1f2   :  { %v1831_v30 = vxor.u32 2147483648, %v2254_v28 }
 0x1f3   :  { %v1835_v27 = vsel %vm1833_vm15, %v1834_v41, %v2254_v28 }
 0x1f4   :  { %v1832_v50 = vsel %vm1830_vm10, %v2252_v17, %v1831_v30 }
 0x1f5   :  { %v1836_v10 = vsel %vm1829_vm14, %v1832_v50, %v1835_v27 }
 0x1f6   :  { %v1837_v54 = vsel %vm1826_vm0, nan, %v1836_v10 }
 0x1f7   :  { %v1853_v3 = vmul.f32 %v1837_v54, %v108_v47 }
 0x1f9   :  { %v1869_v16 = vadd.f32 %v1853_v3, %v92_v12 }
 0x1fb   :  { %v2103_v2 = vpack.c.bf16 %v1869_v16, %v1868_v11 }
 0x1fd   :  { %2111 = vst [vmem:[#allocation12 + $0x38] sm:$0xff] %v2103_v2  }
 0x1fe   :  { %2346 = shalt.err (!%p2343_p10)
}
 0x1ff   :  { %s2376_s16 = smov 64   ;;  %s2377_s17 = smov 4  }
 0x200   :  { %1961 = dma.vmem_to_hbm [thread:$0]  %s1956_s4, 1024, %s3986_s5, [#allocation6], %s2376_s16, %s2376_s16, %s2377_s17  }
 0x201   :  { %2361 = dma.done.wait [#allocation6], 1024  }
 0x202   :  { %2362 = vsyncadd [#allocation6], 4294966272 }
 0x203   :  { %1965 = vsyncpa [#allocation5], 1 }
 0x204   :  { %1966 = vsyncpa [#allocation8], 1 }
 0x205   :  { %1967 = vsyncpa [#allocation11], 1 }
 0x206   :  { %1968 = vsyncpa [#allocation6], 1 }

</bundles_post_ra>
